<compile_context>
chip_gen: v7x
topology: tpu7x:2x2x1
jax: 0.10.0
libtpu: 0.0.40
codegen_flags: <defaults>
</compile_context>

<pallas_src>
import functools

import jax
import jax.numpy as jnp
from jax.experimental import pallas as pl
from jax.experimental.pallas import tpu as pltpu

EPS = 1e-5                        # PyTorch BatchNorm1d default
VMEM_LIMIT = 32 * 1024 * 1024     # safe on v5e / v6e / v7x


# ----------------------------- fused kernel ---------------------------------
def _pointnetfeat_kernel(x_ref,
                         w1_ref, g1_ref, b1_ref,
                         w2_ref, g2_ref, b2_ref,
                         w3_ref, g3_ref, b3_ref,
                         o_ref, *, batch, n_pts, eps):
    """Fused conv1x1+BN(+ReLU) x3 and per-batch max over points.

    Activation layout: rows = B*N points (sublanes), cols = channels (lanes).
    BatchNorm uses batch statistics over all B*N rows, matching torch
    training-mode BatchNorm1d on a (B, C, N) tensor.  Conv bias is omitted
    (cancelled exactly by the BN mean subtraction).
    """
    m = batch * n_pts
    inv_m = 1.0 / float(m)

    def stats(y):
        # Single-pass stats: var = E[y^2] - E[y]^2.  Slightly less robust to
        # cancellation than the two-pass form when |mean| >> std, but fine in
        # f32 at these magnitudes; clamp to >= 0 to keep rsqrt well defined.
        mean = jnp.sum(y, axis=0, keepdims=True) * inv_m
        mean_sq = jnp.sum(y * y, axis=0, keepdims=True) * inv_m
        var = jnp.maximum(mean_sq - mean * mean, 0.0)
        return mean, var

    def conv_bn_relu(h_bf16, w_ref, g_ref, b_ref):
        # 1x1 conv == matmul; bf16 operands, f32 accumulation on the MXU.
        y = jnp.dot(h_bf16, w_ref[...], preferred_element_type=jnp.float32)
        mean, var = stats(y)
        scale = g_ref[...] * jax.lax.rsqrt(var + eps)     # (1, C) f32
        shift = b_ref[...] - mean * scale                 # (1, C) f32
        # BN + ReLU in f32 (one fused mul+add+max pass), store as bf16.
        return jnp.maximum(y * scale + shift, 0.0).astype(jnp.bfloat16)

    h = conv_bn_relu(x_ref[...], w1_ref, g1_ref, b1_ref)   # (M, 64)  bf16
    h = conv_bn_relu(h, w2_ref, g2_ref, b2_ref)            # (M, 128) bf16

    # ---- Layer 3: matmul + stats; BN affine deferred past the max ----------
    y3 = jnp.dot(h, w3_ref[...], preferred_element_type=jnp.float32)
    mean3, var3 = stats(y3)
    scale3 = g3_ref[...] * jax.lax.rsqrt(var3 + eps)        # (1, dim_pn)
    shift3 = b3_ref[...] - mean3 * scale3                   # (1, dim_pn)

    # Per-batch max AND min of the raw y3 (min needed where scale3 < 0).
    y3b = y3.reshape(batch, n_pts, -1)                      # free: N % 8 == 0
    mx = jnp.max(y3b, axis=1)                               # (B, dim_pn)
    mn = jnp.min(y3b, axis=1)                               # (B, dim_pn)

    # max_n(y*scale + shift) == (scale>=0 ? max(y) : min(y)) * scale + shift
    o_ref[...] = jnp.where(scale3 >= 0.0, mx, mn) * scale3 + shift3


# ------------------------------ wrapper --------------------------------------
@jax.jit
def pointnetfeat_forward(x, params):
    """x: (B, 15, N) channel-first like PyTorch.  Returns (B, dim_pn) f32."""
    Bb, cin, n_pts = x.shape
    dim_pn = params["w3"].shape[1]
    m = Bb * n_pts

    # Single small layout+dtype op at the module boundary:
    # (B, C, N) f32 -> (B*N, C) bf16 (channels on the 128-lane axis).
    x2d = jnp.transpose(x, (0, 2, 1)).reshape(m, cin).astype(jnp.bfloat16)

    kernel = functools.partial(_pointnetfeat_kernel,
                               batch=Bb, n_pts=n_pts, eps=EPS)

    def full(shape):
        nd = len(shape)
        return pl.BlockSpec(shape, lambda *_: (0,) * nd)

    return pl.pallas_call(
        kernel,
        out_shape=jax.ShapeDtypeStruct((Bb, dim_pn), jnp.float32),
        grid=(1,),
        in_specs=[
            full((m, cin)),
            full(params["w1"].shape), full(params["g1"].shape), full(params["b1"].shape),
            full(params["w2"].shape), full(params["g2"].shape), full(params["b2"].shape),
            full(params["w3"].shape), full(params["g3"].shape), full(params["b3"].shape),
        ],
        out_specs=full((Bb, dim_pn)),
        compiler_params=pltpu.CompilerParams(
            dimension_semantics=("arbitrary",),
            vmem_limit_bytes=VMEM_LIMIT),
    )(x2d,
      params["w1"], params["g1"], params["b1"],
      params["w2"], params["g2"], params["b2"],
      params["w3"], params["g3"], params["b3"])


# --------------------------- parameters / reference ---------------------------
def init_params(key, dim_pn):
    k1, k2, k3 = jax.random.split(key, 3)

    def conv_w(k, cin, cout):
        # PyTorch Conv1d default init ~ U(-1/sqrt(cin), 1/sqrt(cin)).
        # Bias omitted: exactly cancelled by the following training-mode BN.
        bound = 1.0 / float(cin) ** 0.5
        w = jax.random.uniform(k, (cin, cout), jnp.float32, -bound, bound)
        return w.astype(jnp.bfloat16)

    def bn(c):
        return jnp.ones((1, c), jnp.float32), jnp.zeros((1, c), jnp.float32)

    g1, b1 = bn(64)
    g2, b2 = bn(128)
    g3, b3 = bn(dim_pn)
    return {
        "w1": conv_w(k1, 15, 64), "g1": g1, "b1": b1,
        "w2": conv_w(k2, 64, 128), "g2": g2, "b2": b2,
        "w3": conv_w(k3, 128, dim_pn), "g3": g3, "b3": b3,
    }


def pointnetfeat_reference(x, params):
    """Pure-JAX reference (bf16 matmul operands, two-pass batch-stat BN)."""
    Bb, cin, n_pts = x.shape
    h = jnp.transpose(x, (0, 2, 1)).reshape(Bb * n_pts, cin).astype(jnp.bfloat16)

    def conv_bn(h, w, g, b, relu):
        y = jnp.dot(h, w, preferred_element_type=jnp.float32)
        mean = jnp.mean(y, axis=0, keepdims=True)
        var = jnp.mean(jnp.square(y - mean), axis=0, keepdims=True)
        y = (y - mean) * jax.lax.rsqrt(var + EPS) * g + b
        if relu:
            y = jnp.maximum(y, 0.0).astype(jnp.bfloat16)
        return y

    h = conv_bn(h, params["w1"], params["g1"], params["b1"], True)
    h = conv_bn(h, params["w2"], params["g2"], params["b2"], True)
    h = conv_bn(h, params["w3"], params["g3"], params["b3"], False)
    return jnp.max(h.reshape(Bb, n_pts, -1), axis=1)


# --------------------------------- main ---------------------------------------
if __name__ == "__main__":
    B, NUM_POINTS, DIM_PN = 2, 128, 256   # small shapes consistent with the module

    key = jax.random.PRNGKey(0)
    kx, kp = jax.random.split(key)
    x = jax.random.normal(kx, (B, 3 + 12, NUM_POINTS), jnp.float32)
    params = init_params(kp, DIM_PN)

    out = pointnetfeat_forward(x, params)
    jax.block_until_ready(out)
    assert out.shape == (B, DIM_PN)

    ref = pointnetfeat_reference(x, params)
    assert jnp.max(jnp.abs(out - ref)) < 5e-2

    print("KERNEL_OK")
</pallas_src>

<mosaic_0001>
module attributes {stable_mosaic.version = 11 : i64} {
  func.func @_pointnetfeat_kernel(%arg0: i32, %arg1: memref<256x15xbf16, #tpu.memory_space<vmem>>, %arg2: memref<15x64xbf16, #tpu.memory_space<vmem>>, %arg3: memref<1x64xf32, #tpu.memory_space<vmem>>, %arg4: memref<1x64xf32, #tpu.memory_space<vmem>>, %arg5: memref<64x128xbf16, #tpu.memory_space<vmem>>, %arg6: memref<1x128xf32, #tpu.memory_space<vmem>>, %arg7: memref<1x128xf32, #tpu.memory_space<vmem>>, %arg8: memref<128x256xbf16, #tpu.memory_space<vmem>>, %arg9: memref<1x256xf32, #tpu.memory_space<vmem>>, %arg10: memref<1x256xf32, #tpu.memory_space<vmem>>, %arg11: memref<2x256xf32, #tpu.memory_space<vmem>>) attributes {dimension_semantics = [#tpu.dimension_semantics<arbitrary>], iteration_bounds = array<i64: 1>, scalar_prefetch = 0 : i64, scratch_operands = 0 : i64, tpu.core_type = #tpu.core_type<tc>, window_params = [{pipeline_mode = #tpu.pipeline_mode<synchronous>, transform_indices = @transform_0, window_bounds = array<i64: 256, 15>}, {pipeline_mode = #tpu.pipeline_mode<synchronous>, transform_indices = @transform_1, window_bounds = array<i64: 15, 64>}, {pipeline_mode = #tpu.pipeline_mode<synchronous>, transform_indices = @transform_2, window_bounds = array<i64: 1, 64>}, {pipeline_mode = #tpu.pipeline_mode<synchronous>, transform_indices = @transform_3, window_bounds = array<i64: 1, 64>}, {pipeline_mode = #tpu.pipeline_mode<synchronous>, transform_indices = @transform_4, window_bounds = array<i64: 64, 128>}, {pipeline_mode = #tpu.pipeline_mode<synchronous>, transform_indices = @transform_5, window_bounds = array<i64: 1, 128>}, {pipeline_mode = #tpu.pipeline_mode<synchronous>, transform_indices = @transform_6, window_bounds = array<i64: 1, 128>}, {pipeline_mode = #tpu.pipeline_mode<synchronous>, transform_indices = @transform_7, window_bounds = array<i64: 128, 256>}, {pipeline_mode = #tpu.pipeline_mode<synchronous>, transform_indices = @transform_8, window_bounds = array<i64: 1, 256>}, {pipeline_mode = #tpu.pipeline_mode<synchronous>, transform_indices = @transform_9, window_bounds = array<i64: 1, 256>}, {pipeline_mode = #tpu.pipeline_mode<synchronous>, transform_indices = @transform_10, window_bounds = array<i64: 2, 256>}]} {
    %c0 = arith.constant 0 : index
    %c0_0 = arith.constant 0 : index
    %0 = vector.load %arg1[%c0, %c0_0] : memref<256x15xbf16, #tpu.memory_space<vmem>>, vector<256x15xbf16>
    %c0_1 = arith.constant 0 : index
    %c0_2 = arith.constant 0 : index
    %1 = vector.load %arg2[%c0_1, %c0_2] : memref<15x64xbf16, #tpu.memory_space<vmem>>, vector<15x64xbf16>
    %cst = arith.constant dense<0.000000e+00> : vector<256x64xf32>
    %2 = tpu.matmul %0, %1, %cst {dimension_numbers = #tpu.dot_dimension_numbers<[1], [0], [0], [1], [0, 0, 1, 1], [], []>} : vector<256x15xbf16>, vector<15x64xbf16>, vector<256x64xf32> -> vector<256x64xf32>
    %cst_3 = arith.constant dense<0.000000e+00> : vector<64xf32>
    %3 = vector.multi_reduction <add>, %2, %cst_3 [0] : vector<256x64xf32> to vector<64xf32>
    %4 = vector.shape_cast %3 : vector<64xf32> to vector<1x64xf32>
    %cst_4 = arith.constant 3.906250e-03 : f32
    %5 = vector.broadcast %cst_4 : f32 to vector<1x64xf32>
    %6 = arith.mulf %4, %5 : vector<1x64xf32>
    %7 = arith.mulf %2, %2 : vector<256x64xf32>
    %cst_5 = arith.constant dense<0.000000e+00> : vector<64xf32>
    %8 = vector.multi_reduction <add>, %7, %cst_5 [0] : vector<256x64xf32> to vector<64xf32>
    %9 = vector.shape_cast %8 : vector<64xf32> to vector<1x64xf32>
    %cst_6 = arith.constant 3.906250e-03 : f32
    %10 = vector.broadcast %cst_6 : f32 to vector<1x64xf32>
    %11 = arith.mulf %9, %10 : vector<1x64xf32>
    %12 = arith.mulf %6, %6 : vector<1x64xf32>
    %13 = arith.subf %11, %12 : vector<1x64xf32>
    %cst_7 = arith.constant 0.000000e+00 : f32
    %14 = vector.broadcast %cst_7 : f32 to vector<1x64xf32>
    %15 = arith.maximumf %13, %14 : vector<1x64xf32>
    %c0_8 = arith.constant 0 : index
    %c0_9 = arith.constant 0 : index
    %16 = vector.load %arg3[%c0_8, %c0_9] : memref<1x64xf32, #tpu.memory_space<vmem>>, vector<1x64xf32>
    %cst_10 = arith.constant 9.99999974E-6 : f32
    %17 = vector.broadcast %cst_10 : f32 to vector<1x64xf32>
    %18 = arith.addf %15, %17 : vector<1x64xf32>
    %19 = math.rsqrt %18 : vector<1x64xf32>
    %20 = arith.mulf %16, %19 : vector<1x64xf32>
    %c0_11 = arith.constant 0 : index
    %c0_12 = arith.constant 0 : index
    %21 = vector.load %arg4[%c0_11, %c0_12] : memref<1x64xf32, #tpu.memory_space<vmem>>, vector<1x64xf32>
    %22 = arith.mulf %6, %20 : vector<1x64xf32>
    %23 = arith.subf %21, %22 : vector<1x64xf32>
    %24 = vector.broadcast %20 : vector<1x64xf32> to vector<256x64xf32>
    %25 = arith.mulf %2, %24 : vector<256x64xf32>
    %26 = vector.broadcast %23 : vector<1x64xf32> to vector<256x64xf32>
    %27 = arith.addf %25, %26 : vector<256x64xf32>
    %cst_13 = arith.constant 0.000000e+00 : f32
    %28 = vector.broadcast %cst_13 : f32 to vector<256x64xf32>
    %29 = arith.maximumf %27, %28 : vector<256x64xf32>
    %30 = arith.truncf %29 : vector<256x64xf32> to vector<256x64xbf16>
    %c0_14 = arith.constant 0 : index
    %c0_15 = arith.constant 0 : index
    %31 = vector.load %arg5[%c0_14, %c0_15] : memref<64x128xbf16, #tpu.memory_space<vmem>>, vector<64x128xbf16>
    %cst_16 = arith.constant dense<0.000000e+00> : vector<256x128xf32>
    %32 = tpu.matmul %30, %31, %cst_16 {dimension_numbers = #tpu.dot_dimension_numbers<[1], [0], [0], [1], [0, 0, 1, 1], [], []>} : vector<256x64xbf16>, vector<64x128xbf16>, vector<256x128xf32> -> vector<256x128xf32>
    %cst_17 = arith.constant dense<0.000000e+00> : vector<128xf32>
    %33 = vector.multi_reduction <add>, %32, %cst_17 [0] : vector<256x128xf32> to vector<128xf32>
    %34 = vector.shape_cast %33 : vector<128xf32> to vector<1x128xf32>
    %cst_18 = arith.constant 3.906250e-03 : f32
    %35 = vector.broadcast %cst_18 : f32 to vector<1x128xf32>
    %36 = arith.mulf %34, %35 : vector<1x128xf32>
    %37 = arith.mulf %32, %32 : vector<256x128xf32>
    %cst_19 = arith.constant dense<0.000000e+00> : vector<128xf32>
    %38 = vector.multi_reduction <add>, %37, %cst_19 [0] : vector<256x128xf32> to vector<128xf32>
    %39 = vector.shape_cast %38 : vector<128xf32> to vector<1x128xf32>
    %cst_20 = arith.constant 3.906250e-03 : f32
    %40 = vector.broadcast %cst_20 : f32 to vector<1x128xf32>
    %41 = arith.mulf %39, %40 : vector<1x128xf32>
    %42 = arith.mulf %36, %36 : vector<1x128xf32>
    %43 = arith.subf %41, %42 : vector<1x128xf32>
    %cst_21 = arith.constant 0.000000e+00 : f32
    %44 = vector.broadcast %cst_21 : f32 to vector<1x128xf32>
    %45 = arith.maximumf %43, %44 : vector<1x128xf32>
    %c0_22 = arith.constant 0 : index
    %c0_23 = arith.constant 0 : index
    %46 = vector.load %arg6[%c0_22, %c0_23] : memref<1x128xf32, #tpu.memory_space<vmem>>, vector<1x128xf32>
    %cst_24 = arith.constant 9.99999974E-6 : f32
    %47 = vector.broadcast %cst_24 : f32 to vector<1x128xf32>
    %48 = arith.addf %45, %47 : vector<1x128xf32>
    %49 = math.rsqrt %48 : vector<1x128xf32>
    %50 = arith.mulf %46, %49 : vector<1x128xf32>
    %c0_25 = arith.constant 0 : index
    %c0_26 = arith.constant 0 : index
    %51 = vector.load %arg7[%c0_25, %c0_26] : memref<1x128xf32, #tpu.memory_space<vmem>>, vector<1x128xf32>
    %52 = arith.mulf %36, %50 : vector<1x128xf32>
    %53 = arith.subf %51, %52 : vector<1x128xf32>
    %54 = vector.broadcast %50 : vector<1x128xf32> to vector<256x128xf32>
    %55 = arith.mulf %32, %54 : vector<256x128xf32>
    %56 = vector.broadcast %53 : vector<1x128xf32> to vector<256x128xf32>
    %57 = arith.addf %55, %56 : vector<256x128xf32>
    %cst_27 = arith.constant 0.000000e+00 : f32
    %58 = vector.broadcast %cst_27 : f32 to vector<256x128xf32>
    %59 = arith.maximumf %57, %58 : vector<256x128xf32>
    %60 = arith.truncf %59 : vector<256x128xf32> to vector<256x128xbf16>
    %c0_28 = arith.constant 0 : index
    %c0_29 = arith.constant 0 : index
    %61 = vector.load %arg8[%c0_28, %c0_29] : memref<128x256xbf16, #tpu.memory_space<vmem>>, vector<128x256xbf16>
    %cst_30 = arith.constant dense<0.000000e+00> : vector<256x256xf32>
    %62 = tpu.matmul %60, %61, %cst_30 {dimension_numbers = #tpu.dot_dimension_numbers<[1], [0], [0], [1], [0, 0, 1, 1], [], []>} : vector<256x128xbf16>, vector<128x256xbf16>, vector<256x256xf32> -> vector<256x256xf32>
    %cst_31 = arith.constant dense<0.000000e+00> : vector<256xf32>
    %63 = vector.multi_reduction <add>, %62, %cst_31 [0] : vector<256x256xf32> to vector<256xf32>
    %64 = vector.shape_cast %63 : vector<256xf32> to vector<1x256xf32>
    %cst_32 = arith.constant 3.906250e-03 : f32
    %65 = vector.broadcast %cst_32 : f32 to vector<1x256xf32>
    %66 = arith.mulf %64, %65 : vector<1x256xf32>
    %67 = arith.mulf %62, %62 : vector<256x256xf32>
    %cst_33 = arith.constant dense<0.000000e+00> : vector<256xf32>
    %68 = vector.multi_reduction <add>, %67, %cst_33 [0] : vector<256x256xf32> to vector<256xf32>
    %69 = vector.shape_cast %68 : vector<256xf32> to vector<1x256xf32>
    %cst_34 = arith.constant 3.906250e-03 : f32
    %70 = vector.broadcast %cst_34 : f32 to vector<1x256xf32>
    %71 = arith.mulf %69, %70 : vector<1x256xf32>
    %72 = arith.mulf %66, %66 : vector<1x256xf32>
    %73 = arith.subf %71, %72 : vector<1x256xf32>
    %cst_35 = arith.constant 0.000000e+00 : f32
    %74 = vector.broadcast %cst_35 : f32 to vector<1x256xf32>
    %75 = arith.maximumf %73, %74 : vector<1x256xf32>
    %c0_36 = arith.constant 0 : index
    %c0_37 = arith.constant 0 : index
    %76 = vector.load %arg9[%c0_36, %c0_37] : memref<1x256xf32, #tpu.memory_space<vmem>>, vector<1x256xf32>
    %cst_38 = arith.constant 9.99999974E-6 : f32
    %77 = vector.broadcast %cst_38 : f32 to vector<1x256xf32>
    %78 = arith.addf %75, %77 : vector<1x256xf32>
    %79 = math.rsqrt %78 : vector<1x256xf32>
    %80 = arith.mulf %76, %79 : vector<1x256xf32>
    %c0_39 = arith.constant 0 : index
    %c0_40 = arith.constant 0 : index
    %81 = vector.load %arg10[%c0_39, %c0_40] : memref<1x256xf32, #tpu.memory_space<vmem>>, vector<1x256xf32>
    %82 = arith.mulf %66, %80 : vector<1x256xf32>
    %83 = arith.subf %81, %82 : vector<1x256xf32>
    %84 = vector.shape_cast %62 : vector<256x256xf32> to vector<2x128x256xf32>
    %cst_41 = arith.constant dense<0xFF800000> : vector<2x256xf32>
    %85 = vector.multi_reduction <maximumf>, %84, %cst_41 [1] : vector<2x128x256xf32> to vector<2x256xf32>
    %cst_42 = arith.constant dense<0x7F800000> : vector<2x256xf32>
    %86 = vector.multi_reduction <minimumf>, %84, %cst_42 [1] : vector<2x128x256xf32> to vector<2x256xf32>
    %cst_43 = arith.constant 0.000000e+00 : f32
    %87 = vector.broadcast %cst_43 : f32 to vector<1x256xf32>
    %88 = arith.cmpf oge, %80, %87 : vector<1x256xf32>
    %89 = vector.shape_cast %88 : vector<1x256xi1> to vector<1x256xi1>
    %90 = vector.broadcast %89 : vector<1x256xi1> to vector<2x256xi1>
    %91 = arith.select %90, %85, %86 : vector<2x256xi1>, vector<2x256xf32>
    %92 = vector.broadcast %80 : vector<1x256xf32> to vector<2x256xf32>
    %93 = arith.mulf %91, %92 : vector<2x256xf32>
    %94 = vector.broadcast %83 : vector<1x256xf32> to vector<2x256xf32>
    %95 = arith.addf %93, %94 : vector<2x256xf32>
    %c0_44 = arith.constant 0 : index
    %c0_45 = arith.constant 0 : index
    %96 = vector.load %arg11[%c0_44, %c0_45] : memref<2x256xf32, #tpu.memory_space<vmem>>, vector<2x256xf32>
    tpu.vector_store %arg11[%c0_44, %c0_45], %95 {strides = array<i32>} : memref<2x256xf32, #tpu.memory_space<vmem>>, vector<2x256xf32>,
    return
  }
  func.func @transform_0(%arg0: i32) -> (i32, i32) {
    %c0_i32 = arith.constant 0 : i32
    %c0_i32_0 = arith.constant 0 : i32
    %c0_i32_1 = arith.constant 0 : i32
    return %c0_i32, %c0_i32_0 : i32, i32
  }
  func.func @transform_1(%arg0: i32) -> (i32, i32) {
    %c0_i32 = arith.constant 0 : i32
    %c0_i32_0 = arith.constant 0 : i32
    %c0_i32_1 = arith.constant 0 : i32
    return %c0_i32, %c0_i32_0 : i32, i32
  }
  func.func @transform_2(%arg0: i32) -> (i32, i32) {
    %c0_i32 = arith.constant 0 : i32
    %c0_i32_0 = arith.constant 0 : i32
    %c0_i32_1 = arith.constant 0 : i32
    return %c0_i32, %c0_i32_0 : i32, i32
  }
  func.func @transform_3(%arg0: i32) -> (i32, i32) {
    %c0_i32 = arith.constant 0 : i32
    %c0_i32_0 = arith.constant 0 : i32
    %c0_i32_1 = arith.constant 0 : i32
    return %c0_i32, %c0_i32_0 : i32, i32
  }
  func.func @transform_4(%arg0: i32) -> (i32, i32) {
    %c0_i32 = arith.constant 0 : i32
    %c0_i32_0 = arith.constant 0 : i32
    %c0_i32_1 = arith.constant 0 : i32
    return %c0_i32, %c0_i32_0 : i32, i32
  }
  func.func @transform_5(%arg0: i32) -> (i32, i32) {
    %c0_i32 = arith.constant 0 : i32
    %c0_i32_0 = arith.constant 0 : i32
    %c0_i32_1 = arith.constant 0 : i32
    return %c0_i32, %c0_i32_0 : i32, i32
  }
  func.func @transform_6(%arg0: i32) -> (i32, i32) {
    %c0_i32 = arith.constant 0 : i32
    %c0_i32_0 = arith.constant 0 : i32
    %c0_i32_1 = arith.constant 0 : i32
    return %c0_i32, %c0_i32_0 : i32, i32
  }
  func.func @transform_7(%arg0: i32) -> (i32, i32) {
    %c0_i32 = arith.constant 0 : i32
    %c0_i32_0 = arith.constant 0 : i32
    %c0_i32_1 = arith.constant 0 : i32
    return %c0_i32, %c0_i32_0 : i32, i32
  }
  func.func @transform_8(%arg0: i32) -> (i32, i32) {
    %c0_i32 = arith.constant 0 : i32
    %c0_i32_0 = arith.constant 0 : i32
    %c0_i32_1 = arith.constant 0 : i32
    return %c0_i32, %c0_i32_0 : i32, i32
  }
  func.func @transform_9(%arg0: i32) -> (i32, i32) {
    %c0_i32 = arith.constant 0 : i32
    %c0_i32_0 = arith.constant 0 : i32
    %c0_i32_1 = arith.constant 0 : i32
    return %c0_i32, %c0_i32_0 : i32, i32
  }
  func.func @transform_10(%arg0: i32) -> (i32, i32) {
    %c0_i32 = arith.constant 0 : i32
    %c0_i32_0 = arith.constant 0 : i32
    %c0_i32_1 = arith.constant 0 : i32
    return %c0_i32, %c0_i32_0 : i32, i32
  }
}

</mosaic_0001>

<bundles_post_ra>
// kernel: pointnetfeat_forward.1
= control target key start
LH: loop header
LB: loop body
LE: loop exit
PB: predicated region body
PF: predicated region fallthrough
CT: control target
= control target key end

     0   :  { %vm205_vm0 = vcmask 1046528   ;;  %vm206_vm1 = vcmask 1047552   ;;  %v2249_v1 = vmov 65535   ;;  %vm156_vm2 = vcmask 121856   ;;  %s3319_s0 = inlined_call_operand.vmem [shape: bf16[256,15], index: 0, kind: input, shape index: {}]   ;;  %s3320_s1 = inlined_call_operand.vmem [shape: bf16[15,64], index: 1, kind: input, shape index: {}]   ;;  %s3321_s2 = inlined_call_operand.vmem [shape: f32[1,64], index: 2, kind: input, shape index: {}]   ;;  %s3322_s3 = inlined_call_operand.vmem [shape: f32[1,64], index: 3, kind: input, shape index: {}]   ;;  %s3323_s4 = inlined_call_operand.vmem [shape: bf16[64,128], index: 4, kind: input, shape index: {}]   ;;  %s3324_s5 = inlined_call_operand.vmem [shape: f32[1,128], index: 5, kind: input, shape index: {}]   ;;  %s3325_s6 = inlined_call_operand.vmem [shape: f32[1,128], index: 6, kind: input, shape index: {}]   ;;  %s3326_s7 = inlined_call_operand.vmem [shape: bf16[128,256], index: 7, kind: input, shape index: {}]   ;;  %s3327_s8 = inlined_call_operand.vmem [shape: f32[1,256], index: 8, kind: input, shape index: {}]   ;;  %s3328_s9 = inlined_call_operand.vmem [shape: f32[1,256], index: 9, kind: input, shape index: {}]   ;;  %s3329_s10 = inlined_call_operand.hbm [shape: f32[2,256], index: 10, kind: output, shape index: {}]  }
   0x1   :  { %v2172_v0 = vld [vmem:[%s3320_s1] sm:$0xff]   ;;  %v207_v2 = vsel %vm205_vm0, 4294967295, %v2249_v1  ;;  %v2174_v6 = vld [vmem:[%s3319_s0 + $0x8] sm:$0xff]   ;;  %v2175_v7 = vld [vmem:[%s3319_s0 + $0x10] sm:$0xff]  }
   0x2   :  { %v2173_v3 = vld [vmem:[%s3319_s0] sm:$0xff]   ;;  %v208_v4 = vsel %vm206_vm1, %v207_v2, 0  ;;  %v2176_v8 = vld [vmem:[%s3319_s0 + $0x18] sm:$0xff]   ;;  %v2178_v10 = vld [vmem:[%s3319_s0 + $0x28] sm:$0xff]  }
   0x3   :  { %v210_v5 = vand.u32 %v2172_v0, %v208_v4  ;;  %2080 = vmatprep.mubr.msk.bf16.mxu0 %vm156_vm2, %v2173_v3  ;;  %v2177_v9 = vld [vmem:[%s3319_s0 + $0x20] sm:$0xff]   ;;  %v2179_v11 = vld [vmem:[%s3319_s0 + $0x30] sm:$0xff]  }
   0x5   :  { %2078 = vmatprep.subr.bf16.mxu0 %v210_v5 }
   0x6   :  { %2079 = vmatpush3.bf16.msra.mxu0 %v210_v5 }
   0x9   :  { %2081 = vmatmul.mubr.msk.bf16.vlgmr.msra.gmra.mrb[0].mxu0 %vm156_vm2, %v2174_v6 }
   0xa   :  { %2084 = vmatprep.mubr.msk.bf16.mxu0 %vm156_vm2, %v2175_v7 }
  0x11   :  { %2085 = vmatmul.mubr.msk.bf16.gmra.mrb[4].mxu0 %vm156_vm2, %v2176_v8 }
  0x12   :  { %2088 = vmatprep.mubr.msk.bf16.mxu0 %vm156_vm2, %v2177_v9 }
  0x13   :  { %15 = vsyncpa [#allocation3], 0  ;;  %v2180_v12 = vld [vmem:[%s3319_s0 + $0x38] sm:$0xff]   ;;  %v2181_v13 = vld [vmem:[%s3319_s0 + $0x40] sm:$0xff]   ;;  %vm373_vm3 = vcmask 523264   ;;  %vm1915_vm4 = vcmask 1041409  }
  0x14   :  { %v2182_v14 = vld [vmem:[%s3319_s0 + $0x48] sm:$0xff]   ;;  %v2183_v15 = vld [vmem:[%s3319_s0 + $0x50] sm:$0xff]   ;;  %v2184_v16 = vld [vmem:[%s3319_s0 + $0x58] sm:$0xff]   ;;  %s2252_s23 = smov [#allocation2]  }
  0x15   :  { %v2185_v17 = vld [vmem:[%s3319_s0 + $0x60] sm:$0xff]   ;;  %v2186_v18 = vld [vmem:[%s3319_s0 + $0x68] sm:$0xff]   ;;  %v2187_v19 = vld [vmem:[%s3319_s0 + $0x70] sm:$0xff]   ;;  %s1963_s24 = sshll.u32 %s2252_s23, 4  ;;  %s1964_s24 = int_to_ptr.vmem [resolvable:$true] %s1963_s24 }
  0x16   :  { %v2188_v20 = vld [vmem:[%s3319_s0 + $0x78] sm:$0xff]   ;;  %v2189_v21 = vld [vmem:[%s3323_s4] sm:$0xff]   ;;  %v2190_v22 = vld [vmem:[%s3323_s4 + $0x8] sm:$0xff]   ;;  %s2225_s25 = scalar_lea.vmem %s1964_s24, 64  ;;  %p2230_p1 = scmp.lt.s32.totalorder %s1964_s24, %s1964_s24 }
  0x17   :  { %2112 = vmatprep.subr.bf16.mxu1 %v2189_v21  ;;  %v2191_v23 = vld [vmem:[%s3323_s4 + $0x10] sm:$0xff]   ;;  %v2192_v24 = vld [vmem:[%s3323_s4 + $0x18] sm:$0xff]   ;;  %p2226_p0 = scmp.ne.s32.totalorder %s1964_s24, %s2225_s25  ;;  %p2231_p2 = scmp.lt.s32.totalorder %s2225_s25, %s2225_s25 }
  0x18   :  { %2113 = vmatpush3.bf16.msra.mxu1 %v2189_v21 }
  0x19   :  { %2089 = vmatmul.mubr.msk.bf16.gmra.mrb[8].mxu0 %vm156_vm2, %v2178_v10  ;;  %2114 = vmatprep.subr.bf16.mxu1 %v2190_v22  ;;  %p2232_p3 = por %p2231_p2, %p2230_p1 }
  0x1a   :  { %2092 = vmatprep.mubr.msk.bf16.mxu0 %vm156_vm2, %v2179_v11 }
  0x1b   :  { %p2233_p4 = pnand %p2232_p3, %p2226_p0 }
  0x1c   :  { %2115 = vmatpush3.bf16.msra.mxu1 %v2190_v22 }
  0x1d   :  { %2116 = vmatprep.subr.bf16.mxu1 %v2191_v23 }
  0x20   :  { %2117 = vmatpush3.bf16.msra.mxu1 %v2191_v23 }
  0x21   :  { %2093 = vmatmul.mubr.msk.bf16.gmra.mrb[12].mxu0 %vm156_vm2, %v2180_v12  ;;  %2118 = vmatprep.subr.bf16.mxu1 %v2192_v24 }
  0x22   :  { %2096 = vmatprep.mubr.msk.bf16.mxu0 %vm156_vm2, %v2181_v13 }
  0x24   :  { %2119 = vmatpush3.bf16.msra.mxu1 %v2192_v24 }
  0x29   :  { %2097 = vmatmul.mubr.msk.bf16.gmra.mrb[16].mxu0 %vm156_vm2, %v2182_v14 }
  0x2a   :  { %2100 = vmatprep.mubr.msk.bf16.mxu0 %vm156_vm2, %v2183_v15 }
  0x31   :  { %2101 = vmatmul.mubr.msk.bf16.gmra.mrb[20].mxu0 %vm156_vm2, %v2184_v16 }
  0x32   :  { %2104 = vmatprep.mubr.msk.bf16.mxu0 %vm156_vm2, %v2185_v17 }
  0x39   :  { %2105 = vmatmul.mubr.msk.bf16.gmra.mrb[24].mxu0 %vm156_vm2, %v2186_v18 }
  0x3a   :  { %2108 = vmatprep.mubr.msk.bf16.mxu0 %vm156_vm2, %v2187_v19 }
  0x41   :  { %2109 = vmatmul.mubr.msk.bf16.gmra.mrb[28].mxu0 %vm156_vm2, %v2188_v20 }
  0xdc   :  { %v2387_v25 = vpop.f32.mrb[0].mxu0 }
  0xdd   :  { %v2389_v26 = vpop.f32.mrb[1].mxu0  ;;  %v446_v30 = vmul.f32 %v2387_v25, %v2387_v25  ;;  %v377_v35 = vsel %vm373_vm3, %v2387_v25, 0.0 }
  0xde   :  { %v444_v27 = vmul.f32 %v2389_v26, %v2389_v26  ;;  %v2393_v28 = vpop.f32.mrb[2].mxu0  ;;  %v374_v31 = vsel %vm373_vm3, %v2389_v26, 0.0 }
  0xdf   :  { %v2395_v29 = vpop.f32.mrb[3].mxu0  ;;  %v447_v37 = vmul.f32 %v2393_v28, %v2393_v28  ;;  %v479_v41 = vsel %vm373_vm3, %v446_v30, 0.0  ;;  %v379_v42 = vsel %vm373_vm3, %v2393_v28, 0.0 }
  0xe0   :  { %v375_v32 = vsel %vm373_vm3, %v2395_v29, 0.0  ;;  %v445_v33 = vmul.f32 %v2395_v29, %v2395_v29  ;;  %v476_v36 = vsel %vm373_vm3, %v444_v27, 0.0 }
  0xe1   :  { %v376_v34 = vadd.f32 %v375_v32, %v374_v31  ;;  %v481_v47 = vsel %vm373_vm3, %v447_v37, 0.0 }
  0xe2   :  { %v477_v38 = vsel %vm373_vm3, %v445_v33, 0.0 }
  0xe3   :  { %v378_v39 = vadd.f32 %v377_v35, %v376_v34  ;;  %v478_v40 = vadd.f32 %v477_v38, %v476_v36 }
  0xe4   :  { %v2414_v43 = vpop.f32.mrb[4].mxu0 }
  0xe5   :  { %v480_v44 = vadd.f32 %v479_v41, %v478_v40  ;;  %v2416_v45 = vpop.f32.mrb[5].mxu0  ;;  %v380_v46 = vadd.f32 %v379_v42, %v378_v39  ;;  %v450_v54 = vmul.f32 %v2414_v43, %v2414_v43  ;;  %v385_v60 = vsel %vm373_vm3, %v2414_v43, 0.0 }
  0xe6   :  { %v381_v48 = vsel %vm373_vm3, %v2416_v45, 0.0  ;;  %v448_v49 = vmul.f32 %v2416_v45, %v2416_v45  ;;  %v2423_v50 = vpop.f32.mrb[6].mxu0 }
  0xe7   :  { %v382_v51 = vadd.f32 %v381_v48, %v380_v46  ;;  %v482_v52 = vadd.f32 %v481_v47, %v480_v44  ;;  %v2425_v53 = vpop.f32.mrb[7].mxu0  ;;  %v451_v61 = vmul.f32 %v2423_v50, %v2423_v50  ;;  %v487_v1 = vsel %vm373_vm3, %v450_v54, 0.0 }
  0xe8   :  { %v483_v55 = vsel %vm373_vm3, %v448_v49, 0.0  ;;  %v383_v56 = vsel %vm373_vm3, %v2425_v53, 0.0  ;;  %v449_v57 = vmul.f32 %v2425_v53, %v2425_v53  ;;  %v387_v2 = vsel %vm373_vm3, %v2423_v50, 0.0 }
  0xe9   :  { %v484_v58 = vadd.f32 %v483_v55, %v482_v52  ;;  %v384_v59 = vadd.f32 %v383_v56, %v382_v51  ;;  %v489_v7 = vsel %vm373_vm3, %v451_v61, 0.0 }
  0xea   :  { %v485_v62 = vsel %vm373_vm3, %v449_v57, 0.0 }
  0xeb   :  { %v386_v63 = vadd.f32 %v385_v60, %v384_v59  ;;  %v486_v0 = vadd.f32 %v485_v62, %v484_v58 }
  0xec   :  { %v2442_v3 = vpop.f32.mrb[8].mxu0 }
  0xed   :  { %v488_v4 = vadd.f32 %v487_v1, %v486_v0  ;;  %v2444_v5 = vpop.f32.mrb[9].mxu0  ;;  %v388_v6 = vadd.f32 %v387_v2, %v386_v63  ;;  %v454_v14 = vmul.f32 %v2442_v3, %v2442_v3  ;;  %v393_v20 = vsel %vm373_vm3, %v2442_v3, 0.0 }
  0xee   :  { %v389_v8 = vsel %vm373_vm3, %v2444_v5, 0.0  ;;  %v452_v9 = vmul.f32 %v2444_v5, %v2444_v5  ;;  %v2451_v10 = vpop.f32.mrb[10].mxu0 }
  0xef   :  { %v390_v11 = vadd.f32 %v389_v8, %v388_v6  ;;  %v490_v12 = vadd.f32 %v489_v7, %v488_v4  ;;  %v2453_v13 = vpop.f32.mrb[11].mxu0  ;;  %v455_v21 = vmul.f32 %v2451_v10, %v2451_v10  ;;  %v495_v27 = vsel %vm373_vm3, %v454_v14, 0.0 }
  0xf0   :  { %v491_v15 = vsel %vm373_vm3, %v452_v9, 0.0  ;;  %v391_v16 = vsel %vm373_vm3, %v2453_v13, 0.0  ;;  %v453_v17 = vmul.f32 %v2453_v13, %v2453_v13  ;;  %v395_v30 = vsel %vm373_vm3, %v2451_v10, 0.0 }
  0xf1   :  { %v492_v18 = vadd.f32 %v491_v15, %v490_v12  ;;  %v392_v19 = vadd.f32 %v391_v16, %v390_v11  ;;  %v497_v35 = vsel %vm373_vm3, %v455_v21, 0.0 }
  0xf2   :  { %v493_v22 = vsel %vm373_vm3, %v453_v17, 0.0 }
  0xf3   :  { %v394_v23 = vadd.f32 %v393_v20, %v392_v19  ;;  %v494_v24 = vadd.f32 %v493_v22, %v492_v18 }
  0xf4   :  { %v2470_v31 = vpop.f32.mrb[12].mxu0 }
  0xf5   :  { %v496_v32 = vadd.f32 %v495_v27, %v494_v24  ;;  %v2472_v33 = vpop.f32.mrb[13].mxu0  ;;  %v396_v34 = vadd.f32 %v395_v30, %v394_v23  ;;  %v458_v42 = vmul.f32 %v2470_v31, %v2470_v31  ;;  %v401_v51 = vsel %vm373_vm3, %v2470_v31, 0.0 }
  0xf6   :  { %v397_v36 = vsel %vm373_vm3, %v2472_v33, 0.0  ;;  %v456_v37 = vmul.f32 %v2472_v33, %v2472_v33  ;;  %v2479_v38 = vpop.f32.mrb[14].mxu0 }
  0xf7   :  { %v398_v39 = vadd.f32 %v397_v36, %v396_v34  ;;  %v498_v40 = vadd.f32 %v497_v35, %v496_v32  ;;  %v2481_v41 = vpop.f32.mrb[15].mxu0  ;;  %v459_v52 = vmul.f32 %v2479_v38, %v2479_v38  ;;  %v503_v57 = vsel %vm373_vm3, %v458_v42, 0.0 }
  0xf8   :  { %v499_v44 = vsel %vm373_vm3, %v456_v37, 0.0  ;;  %v399_v46 = vsel %vm373_vm3, %v2481_v41, 0.0  ;;  %v457_v47 = vmul.f32 %v2481_v41, %v2481_v41  ;;  %v403_v58 = vsel %vm373_vm3, %v2479_v38, 0.0 }
  0xf9   :  { %v500_v48 = vadd.f32 %v499_v44, %v498_v40  ;;  %v400_v49 = vadd.f32 %v399_v46, %v398_v39  ;;  %v505_v63 = vsel %vm373_vm3, %v459_v52, 0.0 }
  0xfa   :  { %v501_v54 = vsel %vm373_vm3, %v457_v47, 0.0 }
  0xfb   :  { %v402_v55 = vadd.f32 %v401_v51, %v400_v49  ;;  %v502_v56 = vadd.f32 %v501_v54, %v500_v48 }
  0xfc   :  { %v2498_v59 = vpop.f32.mrb[16].mxu0 }
  0xfd   :  { %v504_v60 = vadd.f32 %v503_v57, %v502_v56  ;;  %v2500_v61 = vpop.f32.mrb[17].mxu0  ;;  %v404_v62 = vadd.f32 %v403_v58, %v402_v55  ;;  %v462_v8 = vmul.f32 %v2498_v59, %v2498_v59  ;;  %v409_v16 = vsel %vm373_vm3, %v2498_v59, 0.0 }
  0xfe   :  { %v405_v0 = vsel %vm373_vm3, %v2500_v61, 0.0  ;;  %v460_v1 = vmul.f32 %v2500_v61, %v2500_v61  ;;  %v2507_v2 = vpop.f32.mrb[18].mxu0 }
  0xff   :  { %v406_v4 = vadd.f32 %v405_v0, %v404_v62  ;;  %v506_v6 = vadd.f32 %v505_v63, %v504_v60  ;;  %v2509_v7 = vpop.f32.mrb[19].mxu0  ;;  %v463_v17 = vmul.f32 %v2507_v2, %v2507_v2  ;;  %v511_v21 = vsel %vm373_vm3, %v462_v8, 0.0 }
 0x100   :  { %v507_v9 = vsel %vm373_vm3, %v460_v1, 0.0  ;;  %v407_v11 = vsel %vm373_vm3, %v2509_v7, 0.0  ;;  %v461_v12 = vmul.f32 %v2509_v7, %v2509_v7  ;;  %v411_v22 = vsel %vm373_vm3, %v2507_v2, 0.0 }
 0x101   :  { %v508_v14 = vadd.f32 %v507_v9, %v506_v6  ;;  %v408_v15 = vadd.f32 %v407_v11, %v406_v4  ;;  %v513_v32 = vsel %vm373_vm3, %v463_v17, 0.0 }
 0x102   :  { %v509_v18 = vsel %vm373_vm3, %v461_v12, 0.0 }
 0x103   :  { %v410_v19 = vadd.f32 %v409_v16, %v408_v15  ;;  %v510_v20 = vadd.f32 %v509_v18, %v508_v14 }
 0x104   :  { %v2526_v23 = vpop.f32.mrb[20].mxu0 }
 0x105   :  { %v512_v24 = vadd.f32 %v511_v21, %v510_v20  ;;  %v2528_v27 = vpop.f32.mrb[21].mxu0  ;;  %v412_v30 = vadd.f32 %v411_v22, %v410_v19  ;;  %v466_v42 = vmul.f32 %v2526_v23, %v2526_v23  ;;  %v417_v51 = vsel %vm373_vm3, %v2526_v23, 0.0 }
 0x106   :  { %v413_v34 = vsel %vm373_vm3, %v2528_v27, 0.0  ;;  %v464_v35 = vmul.f32 %v2528_v27, %v2528_v27  ;;  %v2535_v36 = vpop.f32.mrb[22].mxu0 }
 0x107   :  { %v414_v37 = vadd.f32 %v413_v34, %v412_v30  ;;  %v514_v39 = vadd.f32 %v513_v32, %v512_v24  ;;  %v2537_v40 = vpop.f32.mrb[23].mxu0  ;;  %v467_v52 = vmul.f32 %v2535_v36, %v2535_v36  ;;  %v519_v57 = vsel %vm373_vm3, %v466_v42, 0.0 }
 0x108   :  { %v515_v44 = vsel %vm373_vm3, %v464_v35, 0.0  ;;  %v415_v46 = vsel %vm373_vm3, %v2537_v40, 0.0  ;;  %v465_v47 = vmul.f32 %v2537_v40, %v2537_v40  ;;  %v419_v58 = vsel %vm373_vm3, %v2535_v36, 0.0 }
 0x109   :  { %v516_v48 = vadd.f32 %v515_v44, %v514_v39  ;;  %v416_v49 = vadd.f32 %v415_v46, %v414_v37  ;;  %v521_v1 = vsel %vm373_vm3, %v467_v52, 0.0 }
 0x10a   :  { %v517_v54 = vsel %vm373_vm3, %v465_v47, 0.0 }
 0x10b   :  { %v418_v55 = vadd.f32 %v417_v51, %v416_v49  ;;  %v518_v56 = vadd.f32 %v517_v54, %v516_v48 }
 0x10c   :  { %v2554_v60 = vpop.f32.mrb[24].mxu0 }
 0x10d   :  { %v520_v62 = vadd.f32 %v519_v57, %v518_v56  ;;  %v2556_v63 = vpop.f32.mrb[25].mxu0  ;;  %v420_v0 = vadd.f32 %v419_v58, %v418_v55  ;;  %v470_v14 = vmul.f32 %v2554_v60, %v2554_v60  ;;  %v425_v20 = vsel %vm373_vm3, %v2554_v60, 0.0 }
 0x10e   :  { %v421_v4 = vsel %vm373_vm3, %v2556_v63, 0.0  ;;  %v468_v6 = vmul.f32 %v2556_v63, %v2556_v63  ;;  %v2563_v8 = vpop.f32.mrb[26].mxu0 }
 0x10f   :  { %v422_v9 = vadd.f32 %v421_v4, %v420_v0  ;;  %v522_v11 = vadd.f32 %v521_v1, %v520_v62  ;;  %v2565_v12 = vpop.f32.mrb[27].mxu0  ;;  %v471_v21 = vmul.f32 %v2563_v8, %v2563_v8  ;;  %v527_v32 = vsel %vm373_vm3, %v470_v14, 0.0 }
 0x110   :  { %v523_v15 = vsel %vm373_vm3, %v468_v6, 0.0  ;;  %v423_v16 = vsel %vm373_vm3, %v2565_v12, 0.0  ;;  %v469_v17 = vmul.f32 %v2565_v12, %v2565_v12  ;;  %v427_v34 = vsel %vm373_vm3, %v2563_v8, 0.0 }
 0x111   :  { %v524_v18 = vadd.f32 %v523_v15, %v522_v11  ;;  %v424_v19 = vadd.f32 %v423_v16, %v422_v9  ;;  %v529_v44 = vsel %vm373_vm3, %v471_v21, 0.0 }
 0x112   :  { %v525_v22 = vsel %vm373_vm3, %v469_v17, 0.0 }
 0x113   :  { %v426_v24 = vadd.f32 %v425_v20, %v424_v19  ;;  %v526_v30 = vadd.f32 %v525_v22, %v524_v18 }
 0x114   :  { %v2582_v35 = vpop.f32.mrb[28].mxu0 }
 0x115   :  { %v528_v37 = vadd.f32 %v527_v32, %v526_v30  ;;  %v2584_v39 = vpop.f32.mrb[29].mxu0  ;;  %v428_v42 = vadd.f32 %v427_v34, %v426_v24  ;;  %v474_v54 = vmul.f32 %v2582_v35, %v2582_v35  ;;  %v433_v0 = vsel %vm373_vm3, %v2582_v35, 0.0 }
 0x116   :  { %v429_v46 = vsel %vm373_vm3, %v2584_v39, 0.0  ;;  %v472_v47 = vmul.f32 %v2584_v39, %v2584_v39  ;;  %v2591_v48 = vpop.f32.mrb[30].mxu0 }
 0x117   :  { %v430_v49 = vadd.f32 %v429_v46, %v428_v42  ;;  %v530_v51 = vadd.f32 %v529_v44, %v528_v37  ;;  %v361_v52 = vpop.f32.mrb[31].mxu0  ;;  %v475_v1 = vmul.f32 %v2591_v48, %v2591_v48  ;;  %v535_v11 = vsel %vm373_vm3, %v474_v54, 0.0 }
 0x118   :  { %v531_v55 = vsel %vm373_vm3, %v472_v47, 0.0  ;;  %v431_v56 = vsel %vm373_vm3, %v361_v52, 0.0  ;;  %v473_v57 = vmul.f32 %v361_v52, %v361_v52  ;;  %v435_v14 = vsel %vm373_vm3, %v2591_v48, 0.0 }
 0x119   :  { %v532_v58 = vadd.f32 %v531_v55, %v530_v51  ;;  %v432_v62 = vadd.f32 %v431_v56, %v430_v49  ;;  %v537_v17 = vsel %vm373_vm3, %v475_v1, 0.0 }
 0x11a   :  { %v533_v4 = vsel %vm373_vm3, %v473_v57, 0.0  ;;  %v557_v57 = vlaneseq }
 0x11b   :  { %v434_v6 = vadd.f32 %v433_v0, %v432_v62  ;;  %v534_v9 = vadd.f32 %v533_v4, %v532_v58  ;;  %v549_v62 = vld [vmem:[%s3321_s2] sm:$0x1] }
 0x11c   :  { %v2606_v58 = vshrl.u32 %v557_v57, 7 }
 0x11d   :  { %v436_v15 = vadd.f32 %v435_v14, %v434_v6  ;;  %v536_v16 = vadd.f32 %v535_v11, %v534_v9  ;;  %v553_v6 = vld [vmem:[%s3322_s3] sm:$0x1] }
 0x11e   :  { %3353 = vst [vmem:[#allocation5_spill] sm:$0xff] %v2606_v58  ;;  %v2612_v0 = vsub.s32 0, %v2606_v58 }
 0x11f   :  { %v437_v18 = vrot.slane %v436_v15, 4  ;;  %v538_v19 = vadd.f32 %v537_v17, %v536_v16 }
 0x120   :  { %3354 = vst [vmem:[#allocation6_spill] sm:$0xff] %v2612_v0 }
 0x121   :  { %v438_v20 = vadd.f32 %v437_v18, %v436_v15  ;;  %v539_v21 = vrot.slane %v538_v19, 4 }
 0x123   :  { %v439_v22 = vrot.slane %v438_v20, 2  ;;  %v540_v24 = vadd.f32 %v539_v21, %v538_v19 }
 0x125   :  { %v440_v30 = vadd.f32 %v439_v22, %v438_v20  ;;  %v541_v32 = vrot.slane %v540_v24, 2 }
 0x127   :  { %v441_v34 = vrot.slane %v440_v30, 1  ;;  %v542_v37 = vadd.f32 %v541_v32, %v540_v24 }
 0x129   :  { %v442_v42 = vadd.f32 %v441_v34, %v440_v30  ;;  %v543_v44 = vrot.slane %v542_v37, 1 }
 0x12b   :  { %v443_v46 = vmul.f32 0.00390625, %v442_v42  ;;  %v544_v47 = vadd.f32 %v543_v44, %v542_v37 }
 0x12d   :  { %v545_v49 = vmul.f32 0.00390625, %v544_v47  ;;  %v546_v51 = vmul.f32 %v443_v46, %v443_v46 }
 0x12f   :  { %v547_v54 = vsub.f32 %v545_v49, %v546_v51 }
 0x131   :  { %v548_v55 = vmax.f32 %v547_v54, 0.0 }
 0x133   :  { %v550_v56 = vadd.f32 1e-05, %v548_v55 }
 0x135   :  { %2217 = vrsqrt.f32 %v550_v56 }
 0x13f   :  { %v2218_v1 = vpop.eup %2217 }
 0x140   :  { %v552_v4 = vmul.f32 %v2218_v1, %v549_v62 }
 0x142   :  { %v554_v9 = vmul.f32 %v552_v4, %v443_v46  ;;  %v560_v11 = vrot.slane %v552_v4, %v2612_v0 }
 0x144   :  { %v555_v14 = vsub.f32 %v553_v6, %v554_v9  ;;  %v591_v15 = vmul.f32 %v560_v11, %v361_v52  ;;  %v2619_v16 = vmul.f32 %v560_v11, %v2389_v26  ;;  %v2622_v17 = vmul.f32 %v560_v11, %v2395_v29 }
 0x145   :  { %v564_v18 = vmul.f32 %v2387_v25, %v560_v11  ;;  %v565_v19 = vmul.f32 %v2393_v28, %v560_v11  ;;  %v566_v20 = vmul.f32 %v560_v11, %v2416_v45  ;;  %v567_v21 = vmul.f32 %v560_v11, %v2425_v53 }
 0x146   :  { %v2629_v22 = vrot.slane %v555_v14, %v2612_v0  ;;  %v568_v24 = vmul.f32 %v2414_v43, %v560_v11  ;;  %v569_v52 = vmul.f32 %v2423_v50, %v560_v11  ;;  %v570_v26 = vmul.f32 %v560_v11, %v2444_v5 }
 0x147   :  { %v571_v29 = vmul.f32 %v560_v11, %v2453_v13  ;;  %v572_v30 = vmul.f32 %v2442_v3, %v560_v11  ;;  %v573_v25 = vmul.f32 %v2451_v10, %v560_v11  ;;  %v574_v28 = vmul.f32 %v560_v11, %v2472_v33 }
 0x148   :  { %v2639_v45 = vadd.f32 %v2629_v22, %v591_v15  ;;  %v575_v53 = vmul.f32 %v560_v11, %v2481_v41  ;;  %v576_v32 = vmul.f32 %v2470_v31, %v560_v11  ;;  %v577_v43 = vmul.f32 %v2479_v38, %v560_v11 }
 0x149   :  { %v578_v50 = vmul.f32 %v560_v11, %v2500_v61  ;;  %v579_v5 = vmul.f32 %v560_v11, %v2509_v7  ;;  %v580_v13 = vmul.f32 %v2498_v59, %v560_v11  ;;  %v581_v3 = vmul.f32 %v2507_v2, %v560_v11 }
 0x14a   :  { %v661_v10 = vmax.f32 %v2639_v45, 0.0  ;;  %v582_v33 = vmul.f32 %v560_v11, %v2528_v27  ;;  %v583_v34 = vmul.f32 %v560_v11, %v2537_v40  ;;  %v584_v41 = vmul.f32 %v2526_v23, %v560_v11  ;;  %v2195_v45 = vld [vmem:[%s3326_s7 + $0x4] ss:$8 sps:$4 sm:$0xff]  }
 0x14b   :  { %v585_v31 = vmul.f32 %v2535_v36, %v560_v11  ;;  %v586_v38 = vmul.f32 %v560_v11, %v2556_v63  ;;  %v587_v61 = vmul.f32 %v560_v11, %v2565_v12  ;;  %v588_v7 = vmul.f32 %v2554_v60, %v560_v11  ;;  %1259 = vmatprep.subr.bf16.mxu0 %v2195_v45 }
 0x14c   :  { %v589_v59 = vmul.f32 %v2563_v8, %v560_v11  ;;  %v590_v2 = vmul.f32 %v560_v11, %v2584_v39  ;;  %v592_v37 = vmul.f32 %v2582_v35, %v560_v11  ;;  %v593_v27 = vmul.f32 %v2591_v48, %v560_v11  ;;  %2152 = vmatprep.subr.bf16.mxu1 %v2195_v45 }
 0x14d   :  { %v602_v40 = vadd.f32 %v2629_v22, %v564_v18  ;;  %v603_v23 = vadd.f32 %v2629_v22, %v565_v19  ;;  %v604_v36 = vadd.f32 %v2629_v22, %v566_v20  ;;  %v605_v63 = vadd.f32 %v2629_v22, %v567_v21 }
 0x14e   :  { %v606_v12 = vadd.f32 %v2629_v22, %v568_v24  ;;  %v607_v60 = vadd.f32 %v2629_v22, %v569_v52  ;;  %v608_v8 = vadd.f32 %v2629_v22, %v570_v26  ;;  %v609_v39 = vadd.f32 %v2629_v22, %v571_v29 }
 0x14f   :  { %v610_v35 = vadd.f32 %v2629_v22, %v572_v30  ;;  %v611_v48 = vadd.f32 %v2629_v22, %v573_v25  ;;  %v612_v42 = vadd.f32 %v2629_v22, %v574_v28  ;;  %v613_v44 = vadd.f32 %v2629_v22, %v575_v53 }
 0x150   :  { %v614_v46 = vadd.f32 %v2629_v22, %v576_v32  ;;  %v615_v47 = vadd.f32 %v2629_v22, %v577_v43  ;;  %v616_v49 = vadd.f32 %v2629_v22, %v578_v50  ;;  %v617_v51 = vadd.f32 %v2629_v22, %v579_v5 }
 0x151   :  { %v618_v54 = vadd.f32 %v2629_v22, %v580_v13  ;;  %v619_v55 = vadd.f32 %v2629_v22, %v581_v3  ;;  %v620_v56 = vadd.f32 %v2629_v22, %v582_v33  ;;  %v621_v57 = vadd.f32 %v2629_v22, %v583_v34 }
 0x152   :  { %v622_v62 = vadd.f32 %v2629_v22, %v584_v41  ;;  %v623_v1 = vadd.f32 %v2629_v22, %v585_v31  ;;  %v624_v4 = vadd.f32 %v2629_v22, %v586_v38  ;;  %v625_v6 = vadd.f32 %v2629_v22, %v587_v61 }
 0x153   :  { %v626_v9 = vadd.f32 %v2629_v22, %v588_v7  ;;  %v627_v11 = vadd.f32 %v2629_v22, %v589_v59  ;;  %v628_v14 = vadd.f32 %v2629_v22, %v590_v2  ;;  %v630_v15 = vadd.f32 %v2629_v22, %v592_v37 }
 0x154   :  { %v631_v18 = vadd.f32 %v2629_v22, %v593_v27  ;;  %v634_v19 = vmax.f32 %v602_v40, 0.0  ;;  %v635_v20 = vmax.f32 %v603_v23, 0.0  ;;  %v636_v21 = vmax.f32 %v604_v36, 0.0 }
 0x155   :  { %v637_v24 = vmax.f32 %v605_v63, 0.0  ;;  %v638_v52 = vmax.f32 %v606_v12, 0.0  ;;  %v639_v26 = vmax.f32 %v607_v60, 0.0  ;;  %v640_v29 = vmax.f32 %v608_v8, 0.0 }
 0x156   :  { %v641_v30 = vmax.f32 %v609_v39, 0.0  ;;  %v642_v25 = vmax.f32 %v610_v35, 0.0  ;;  %v643_v28 = vmax.f32 %v611_v48, 0.0  ;;  %v644_v53 = vmax.f32 %v612_v42, 0.0 }
 0x157   :  { %v645_v32 = vmax.f32 %v613_v44, 0.0  ;;  %v646_v43 = vmax.f32 %v614_v46, 0.0  ;;  %v647_v50 = vmax.f32 %v615_v47, 0.0  ;;  %v648_v5 = vmax.f32 %v616_v49, 0.0 }
 0x158   :  { %v649_v13 = vmax.f32 %v617_v51, 0.0  ;;  %v650_v3 = vmax.f32 %v618_v54, 0.0  ;;  %v651_v33 = vmax.f32 %v619_v55, 0.0  ;;  %v652_v34 = vmax.f32 %v620_v56, 0.0 }
 0x159   :  { %v653_v41 = vmax.f32 %v621_v57, 0.0  ;;  %v654_v31 = vmax.f32 %v622_v62, 0.0  ;;  %v655_v38 = vmax.f32 %v623_v1, 0.0  ;;  %v656_v61 = vmax.f32 %v624_v4, 0.0  ;;  %v2198_v57 = vld [vmem:[%s3326_s7 + $0x14] ss:$8 sps:$4 sm:$0xff]  }
 0x15a   :  { %v657_v7 = vmax.f32 %v625_v6, 0.0  ;;  %v658_v59 = vmax.f32 %v626_v9, 0.0  ;;  %v659_v2 = vmax.f32 %v627_v11, 0.0  ;;  %v660_v37 = vmax.f32 %v628_v14, 0.0  ;;  %v2201_v62 = vld [vmem:[%s3326_s7 + $0x24] ss:$8 sps:$4 sm:$0xff]  }
 0x15b   :  { %v662_v27 = vmax.f32 %v630_v15, 0.0  ;;  %v663_v40 = vmax.f32 %v631_v18, 0.0  ;;  %v600_v23 = vadd.f32 %v2629_v22, %v2619_v16  ;;  %v601_v36 = vadd.f32 %v2629_v22, %v2622_v17  ;;  %v2193_v22 = vld [vmem:[%s3326_s7] ss:$8 sps:$4 sm:$0xff]   ;;  %v2204_v4 = vld [vmem:[%s3326_s7 + $0x34] ss:$8 sps:$4 sm:$0xff]  }
 0x15c   :  { %v665_v63 = vpack.c.bf16 %v635_v20, %v634_v19  ;;  %v666_v12 = vpack.c.bf16 %v637_v24, %v636_v21  ;;  %v667_v60 = vpack.c.bf16 %v639_v26, %v638_v52  ;;  %v668_v8 = vpack.c.bf16 %v641_v30, %v640_v29  ;;  %1260 = vmatpush1.bf16.msra.mxu0 %v2193_v22  ;;  %v2199_v1 = vld [vmem:[%s3326_s7 + $0x20] ss:$8 sps:$4 sm:$0xff]   ;;  %v2202_v6 = vld [vmem:[%s3326_s7 + $0x30] ss:$8 sps:$4 sm:$0xff]   ;;  %v2207_v9 = vld [vmem:[%s3326_s7 + $0x44] ss:$8 sps:$4 sm:$0xff]  }
 0x15d   :  { %v632_v39 = vmax.f32 %v600_v23, 0.0  ;;  %v633_v35 = vmax.f32 %v601_v36, 0.0  ;;  %v669_v48 = vpack.c.bf16 %v643_v28, %v642_v25  ;;  %v670_v42 = vpack.c.bf16 %v645_v32, %v644_v53  ;;  %1261 = vmatprep.subr.bf16.mxu0 %v2198_v57  ;;  %v2205_v11 = vld [vmem:[%s3326_s7 + $0x40] ss:$8 sps:$4 sm:$0xff]   ;;  %v2210_v14 = vld [vmem:[%s3326_s7 + $0x54] ss:$8 sps:$4 sm:$0xff]  }
 0x15e   :  { %v671_v44 = vpack.c.bf16 %v647_v50, %v646_v43  ;;  %v672_v46 = vpack.c.bf16 %v649_v13, %v648_v5  ;;  %v673_v47 = vpack.c.bf16 %v651_v33, %v650_v3  ;;  %v674_v49 = vpack.c.bf16 %v653_v41, %v652_v34  ;;  %v2208_v15 = vld [vmem:[%s3326_s7 + $0x50] ss:$8 sps:$4 sm:$0xff]   ;;  %v2213_v18 = vld [vmem:[%s3326_s7 + $0x64] ss:$8 sps:$4 sm:$0xff]   ;;  %v2211_v19 = vld [vmem:[%s3326_s7 + $0x60] ss:$8 sps:$4 sm:$0xff]  }
 0x15f   :  { %v664_v51 = vpack.c.bf16 %v633_v35, %v632_v39  ;;  %v675_v54 = vpack.c.bf16 %v655_v38, %v654_v31  ;;  %v676_v55 = vpack.c.bf16 %v657_v7, %v656_v61  ;;  %v677_v56 = vpack.c.bf16 %v659_v2, %v658_v59  ;;  %v2216_v20 = vld [vmem:[%s3326_s7 + $0x74] ss:$8 sps:$4 sm:$0xff]   ;;  %v2214_v21 = vld [vmem:[%s3326_s7 + $0x70] ss:$8 sps:$4 sm:$0xff]  }
 0x160   :  { %v678_v16 = vpack.c.bf16 %v661_v10, %v660_v37  ;;  %v679_v17 = vpack.c.bf16 %v663_v40, %v662_v27  ;;  %v2196_v10 = vld [vmem:[%s3326_s7 + $0x10] ss:$8 sps:$4 sm:$0xff]   ;;  %v3330_v24 = vmov 0  }
 0x161   :  { %2120 = vmatprep.mubr.msk.bf16.mxu1 %vm373_vm3, %v664_v51  ;;  %1262 = vmatpush1.bf16.msra.mxu0 %v2196_v10 }
 0x162   :  { %2121 = vmatmul.mubr.msk.bf16.vlgmr.msra.gmra.mrb[0].mxu1 %vm373_vm3, %v665_v63  ;;  %1263 = vmatprep.subr.bf16.mxu0 %v2201_v62 }
 0x163   :  { %2124 = vmatprep.mubr.msk.bf16.mxu1 %vm373_vm3, %v666_v12  ;;  %2160 = vmatpush1.bf16.msra.mxu1 %v2193_v22 }
 0x164   :  { %2153 = vmatprep.subr.bf16.mxu1 %v2198_v57  ;;  %1291 = vmatprep.mubr.bf16.mxu0 %v3330_v24 }
 0x165   :  { %1264 = vmatpush1.bf16.msra.mxu0 %v2199_v1 }
 0x166   :  { %1265 = vmatprep.subr.bf16.mxu0 %v2204_v4 }
 0x167   :  { %2161 = vmatpush1.bf16.msra.mxu1 %v2196_v10 }
 0x168   :  { %2154 = vmatprep.subr.bf16.mxu1 %v2201_v62 }
 0x169   :  { %1266 = vmatpush1.bf16.msra.mxu0 %v2202_v6 }
 0x16a   :  { %2125 = vmatmul.mubr.msk.bf16.gmra.mrb[4].mxu1 %vm373_vm3, %v667_v60  ;;  %1267 = vmatprep.subr.bf16.mxu0 %v2207_v9 }
 0x16b   :  { %2128 = vmatprep.mubr.msk.bf16.mxu1 %vm373_vm3, %v668_v8  ;;  %2162 = vmatpush1.bf16.msra.mxu1 %v2199_v1 }
 0x16c   :  { %2155 = vmatprep.subr.bf16.mxu1 %v2204_v4 }
 0x16d   :  { %1268 = vmatpush1.bf16.msra.mxu0 %v2205_v11 }
 0x16e   :  { %1269 = vmatprep.subr.bf16.mxu0 %v2210_v14 }
 0x16f   :  { %2163 = vmatpush1.bf16.msra.mxu1 %v2202_v6 }
 0x170   :  { %2156 = vmatprep.subr.bf16.mxu1 %v2207_v9 }
 0x171   :  { %1270 = vmatpush1.bf16.msra.mxu0 %v2208_v15 }
 0x172   :  { %2129 = vmatmul.mubr.msk.bf16.gmra.mrb[8].mxu1 %vm373_vm3, %v669_v48  ;;  %1271 = vmatprep.subr.bf16.mxu0 %v2213_v18 }
 0x173   :  { %2132 = vmatprep.mubr.msk.bf16.mxu1 %vm373_vm3, %v670_v42  ;;  %2164 = vmatpush1.bf16.msra.mxu1 %v2205_v11 }
 0x174   :  { %2157 = vmatprep.subr.bf16.mxu1 %v2210_v14 }
 0x175   :  { %1272 = vmatpush1.bf16.msra.mxu0 %v2211_v19 }
 0x176   :  { %1273 = vmatprep.subr.bf16.mxu0 %v2216_v20 }
 0x177   :  { %2165 = vmatpush1.bf16.msra.mxu1 %v2208_v15 }
 0x178   :  { %2158 = vmatprep.subr.bf16.mxu1 %v2213_v18 }
 0x179   :  { %1274 = vmatpush1.bf16.msra.mxu0 %v2214_v21 }
 0x17a   :  { %2133 = vmatmul.mubr.msk.bf16.gmra.mrb[12].mxu1 %vm373_vm3, %v671_v44 }
 0x17b   :  { %2136 = vmatprep.mubr.msk.bf16.mxu1 %vm373_vm3, %v672_v46  ;;  %2166 = vmatpush1.bf16.msra.mxu1 %v2211_v19 }
 0x17c   :  { %2159 = vmatprep.subr.bf16.mxu1 %v2216_v20 }
 0x17f   :  { %2167 = vmatpush1.bf16.msra.mxu1 %v2214_v21 }
 0x182   :  { %2137 = vmatmul.mubr.msk.bf16.gmra.mrb[16].mxu1 %vm373_vm3, %v673_v47 }
 0x183   :  { %2140 = vmatprep.mubr.msk.bf16.mxu1 %vm373_vm3, %v674_v49 }
 0x18a   :  { %2141 = vmatmul.mubr.msk.bf16.gmra.mrb[20].mxu1 %vm373_vm3, %v675_v54 }
 0x18b   :  { %2144 = vmatprep.mubr.msk.bf16.mxu1 %vm373_vm3, %v676_v55 }
 0x192   :  { %2145 = vmatmul.mubr.msk.bf16.gmra.mrb[24].mxu1 %vm373_vm3, %v677_v56 }
 0x193   :  { %2148 = vmatprep.mubr.msk.bf16.mxu1 %vm373_vm3, %v678_v16 }
 0x19a   :  { %2149 = vmatmul.mubr.msk.bf16.gmra.mrb[28].mxu1 %vm373_vm3, %v679_v17 }
 0x19b   :  { %1381 = vmatprep.mubr.bf16.mxu1 %v3330_v24 }
 0x235   :  { %v2761_v52 = vpop.f32.mrb[0].mxu1 }
 0x236   :  { %v2763_v26 = vpop.f32.mrb[1].mxu1  ;;  %v961_v32 = vmul.f32 %v2761_v52, %v2761_v52 }
 0x237   :  { %v2765_v29 = vpop.f32.mrb[2].mxu1  ;;  %v959_v25 = vmul.f32 %v2763_v26, %v2763_v26 }
 0x238   :  { %v2767_v30 = vpop.f32.mrb[3].mxu1  ;;  %v962_v5 = vmul.f32 %v2765_v29, %v2765_v29 }
 0x239   :  { %v921_v28 = vadd.f32 %v2767_v30, %v2763_v26  ;;  %v960_v53 = vmul.f32 %v2767_v30, %v2767_v30 }
 0x23b   :  { %v922_v43 = vadd.f32 %v2761_v52, %v921_v28  ;;  %v991_v50 = vadd.f32 %v960_v53, %v959_v25 }
 0x23d   :  { %v992_v13 = vadd.f32 %v991_v50, %v961_v32  ;;  %v2780_v3 = vpop.f32.mrb[4].mxu1  ;;  %v923_v33 = vadd.f32 %v2765_v29, %v922_v43 }
 0x23e   :  { %v2783_v34 = vpop.f32.mrb[5].mxu1  ;;  %v965_v27 = vmul.f32 %v2780_v3, %v2780_v3 }
 0x23f   :  { %v924_v41 = vadd.f32 %v923_v33, %v2783_v34  ;;  %v963_v31 = vmul.f32 %v2783_v34, %v2783_v34  ;;  %v993_v38 = vadd.f32 %v992_v13, %v962_v5  ;;  %v2788_v61 = vpop.f32.mrb[6].mxu1 }
 0x240   :  { %v2790_v7 = vpop.f32.mrb[7].mxu1  ;;  %v966_v36 = vmul.f32 %v2788_v61, %v2788_v61 }
 0x241   :  { %v994_v59 = vadd.f32 %v993_v38, %v963_v31  ;;  %v925_v2 = vadd.f32 %v924_v41, %v2790_v7  ;;  %v964_v37 = vmul.f32 %v2790_v7, %v2790_v7 }
 0x243   :  { %v926_v40 = vadd.f32 %v2780_v3, %v925_v2  ;;  %v995_v23 = vadd.f32 %v994_v59, %v964_v37 }
 0x245   :  { %v996_v63 = vadd.f32 %v995_v23, %v965_v27  ;;  %v2800_v12 = vpop.f32.mrb[8].mxu1  ;;  %v927_v60 = vadd.f32 %v2788_v61, %v926_v40 }
 0x246   :  { %v2803_v8 = vpop.f32.mrb[9].mxu1  ;;  %v969_v51 = vmul.f32 %v2800_v12, %v2800_v12 }
 0x247   :  { %v928_v39 = vadd.f32 %v927_v60, %v2803_v8  ;;  %v967_v35 = vmul.f32 %v2803_v8, %v2803_v8  ;;  %v997_v48 = vadd.f32 %v996_v63, %v966_v36  ;;  %v2808_v42 = vpop.f32.mrb[10].mxu1 }
 0x248   :  { %v2810_v44 = vpop.f32.mrb[11].mxu1  ;;  %v970_v56 = vmul.f32 %v2808_v42, %v2808_v42 }
 0x249   :  { %v998_v46 = vadd.f32 %v997_v48, %v967_v35  ;;  %v929_v47 = vadd.f32 %v928_v39, %v2810_v44  ;;  %v968_v49 = vmul.f32 %v2810_v44, %v2810_v44 }
 0x24b   :  { %v930_v54 = vadd.f32 %v2800_v12, %v929_v47  ;;  %v999_v55 = vadd.f32 %v998_v46, %v968_v49 }
 0x24d   :  { %v1000_v16 = vadd.f32 %v999_v55, %v969_v51  ;;  %v2820_v17 = vpop.f32.mrb[12].mxu1  ;;  %v931_v22 = vadd.f32 %v2808_v42, %v930_v54 }
 0x24e   :  { %v2823_v45 = vpop.f32.mrb[13].mxu1  ;;  %v973_v14 = vmul.f32 %v2820_v17, %v2820_v17 }
 0x24f   :  { %v932_v10 = vadd.f32 %v931_v22, %v2823_v45  ;;  %v971_v57 = vmul.f32 %v2823_v45, %v2823_v45  ;;  %v1001_v62 = vadd.f32 %v1000_v16, %v970_v56  ;;  %v2828_v1 = vpop.f32.mrb[14].mxu1 }
 0x250   :  { %v2830_v4 = vpop.f32.mrb[15].mxu1  ;;  %v974_v19 = vmul.f32 %v2828_v1, %v2828_v1 }
 0x251   :  { %v1002_v6 = vadd.f32 %v1001_v62, %v971_v57  ;;  %v933_v9 = vadd.f32 %v932_v10, %v2830_v4  ;;  %v972_v11 = vmul.f32 %v2830_v4, %v2830_v4 }
 0x253   :  { %v934_v15 = vadd.f32 %v2820_v17, %v933_v9  ;;  %v1003_v18 = vadd.f32 %v1002_v6, %v972_v11 }
 0x255   :  { %v1004_v20 = vadd.f32 %v1003_v18, %v973_v14  ;;  %v2840_v21 = vpop.f32.mrb[16].mxu1  ;;  %v935_v25 = vadd.f32 %v2828_v1, %v934_v15 }
 0x256   :  { %v2843_v28 = vpop.f32.mrb[17].mxu1  ;;  %v977_v31 = vmul.f32 %v2840_v21, %v2840_v21 }
 0x257   :  { %v936_v53 = vadd.f32 %v935_v25, %v2843_v28  ;;  %v975_v32 = vmul.f32 %v2843_v28, %v2843_v28  ;;  %v1005_v43 = vadd.f32 %v1004_v20, %v974_v19  ;;  %v2848_v50 = vpop.f32.mrb[18].mxu1 }
 0x258   :  { %v2850_v5 = vpop.f32.mrb[19].mxu1  ;;  %v978_v2 = vmul.f32 %v2848_v50, %v2848_v50 }
 0x259   :  { %v1006_v13 = vadd.f32 %v1005_v43, %v975_v32  ;;  %v937_v33 = vadd.f32 %v936_v53, %v2850_v5  ;;  %v976_v41 = vmul.f32 %v2850_v5, %v2850_v5 }
 0x25b   :  { %v938_v38 = vadd.f32 %v2840_v21, %v937_v33  ;;  %v1007_v59 = vadd.f32 %v1006_v13, %v976_v41 }
 0x25d   :  { %v1008_v37 = vadd.f32 %v1007_v59, %v977_v31  ;;  %v2860_v27 = vpop.f32.mrb[20].mxu1  ;;  %v939_v40 = vadd.f32 %v2848_v50, %v938_v38 }
 0x25e   :  { %v2863_v23 = vpop.f32.mrb[21].mxu1  ;;  %v981_v49 = vmul.f32 %v2860_v27, %v2860_v27 }
 0x25f   :  { %v940_v36 = vadd.f32 %v939_v40, %v2863_v23  ;;  %v979_v63 = vmul.f32 %v2863_v23, %v2863_v23  ;;  %v1009_v60 = vadd.f32 %v1008_v37, %v978_v2  ;;  %v2868_v39 = vpop.f32.mrb[22].mxu1 }
 0x260   :  { %v2870_v35 = vpop.f32.mrb[23].mxu1  ;;  %v982_v55 = vmul.f32 %v2868_v39, %v2868_v39 }
 0x261   :  { %v1010_v48 = vadd.f32 %v1009_v60, %v979_v63  ;;  %v941_v46 = vadd.f32 %v940_v36, %v2870_v35  ;;  %v980_v47 = vmul.f32 %v2870_v35, %v2870_v35 }
 0x263   :  { %v942_v51 = vadd.f32 %v2860_v27, %v941_v46  ;;  %v1011_v54 = vadd.f32 %v1010_v48, %v980_v47 }
 0x265   :  { %v1012_v56 = vadd.f32 %v1011_v54, %v981_v49  ;;  %v2880_v16 = vpop.f32.mrb[24].mxu1  ;;  %v943_v22 = vadd.f32 %v2868_v39, %v942_v51 }
 0x266   :  { %v2883_v10 = vpop.f32.mrb[25].mxu1  ;;  %v985_v19 = vmul.f32 %v2880_v16, %v2880_v16 }
 0x267   :  { %v944_v57 = vadd.f32 %v943_v22, %v2883_v10  ;;  %v983_v62 = vmul.f32 %v2883_v10, %v2883_v10  ;;  %v1013_v6 = vadd.f32 %v1012_v56, %v982_v55  ;;  %v2888_v9 = vpop.f32.mrb[26].mxu1 }
 0x268   :  { %v2890_v11 = vpop.f32.mrb[27].mxu1  ;;  %v986_v53 = vmul.f32 %v2888_v9, %v2888_v9 }
 0x269   :  { %v1014_v14 = vadd.f32 %v1013_v6, %v983_v62  ;;  %v945_v15 = vadd.f32 %v944_v57, %v2890_v11  ;;  %v984_v18 = vmul.f32 %v2890_v11, %v2890_v11 }
 0x26b   :  { %v946_v20 = vadd.f32 %v2880_v16, %v945_v15  ;;  %v1015_v25 = vadd.f32 %v1014_v14, %v984_v18 }
 0x26d   :  { %v1016_v32 = vadd.f32 %v1015_v25, %v985_v19  ;;  %v2900_v43 = vpop.f32.mrb[28].mxu1  ;;  %v947_v13 = vadd.f32 %v2888_v9, %v946_v20 }
 0x26e   :  { %v2903_v33 = vpop.f32.mrb[29].mxu1  ;;  %v989_v63 = vmul.f32 %v2900_v43, %v2900_v43 }
 0x26f   :  { %v948_v41 = vadd.f32 %v947_v13, %v2903_v33  ;;  %v987_v31 = vmul.f32 %v2903_v33, %v2903_v33  ;;  %v1017_v38 = vadd.f32 %v1016_v32, %v986_v53  ;;  %v2908_v59 = vpop.f32.mrb[30].mxu1 }
 0x270   :  { %v909_v2 = vpop.f32.mrb[31].mxu1  ;;  %v990_v46 = vmul.f32 %v2908_v59, %v2908_v59 }
 0x271   :  { %v1018_v37 = vadd.f32 %v1017_v38, %v987_v31  ;;  %v949_v40 = vadd.f32 %v948_v41, %v909_v2  ;;  %v988_v36 = vmul.f32 %v909_v2, %v909_v2  ;;  %v1032_v38 = vld [vmem:[%s3324_s5] sm:$0x1] }
 0x273   :  { %v950_v60 = vadd.f32 %v2900_v43, %v949_v40  ;;  %v1019_v48 = vadd.f32 %v1018_v37, %v988_v36  ;;  %v1036_v36 = vld [vmem:[%s3325_s6] sm:$0x1] }
 0x275   :  { %v951_v47 = vadd.f32 %v2908_v59, %v950_v60  ;;  %v1020_v49 = vadd.f32 %v1019_v48, %v989_v63 }
 0x277   :  { %v952_v51 = vrot.slane %v951_v47, 4  ;;  %v1021_v54 = vadd.f32 %v1020_v49, %v990_v46 }
 0x279   :  { %v953_v55 = vadd.f32 %v952_v51, %v951_v47  ;;  %v1022_v56 = vrot.slane %v1021_v54, 4 }
 0x27b   :  { %v954_v22 = vrot.slane %v953_v55, 2  ;;  %v1023_v57 = vadd.f32 %v1022_v56, %v1021_v54 }
 0x27d   :  { %v955_v62 = vadd.f32 %v954_v22, %v953_v55  ;;  %v1024_v6 = vrot.slane %v1023_v57, 2 }
 0x27f   :  { %v956_v14 = vrot.slane %v955_v62, 1  ;;  %v1025_v15 = vadd.f32 %v1024_v6, %v1023_v57 }
 0x281   :  { %v957_v18 = vadd.f32 %v956_v14, %v955_v62  ;;  %v1026_v19 = vrot.slane %v1025_v15, 1 }
 0x283   :  { %v958_v20 = vmul.f32 0.00390625, %v957_v18  ;;  %v1027_v25 = vadd.f32 %v1026_v19, %v1025_v15 }
 0x285   :  { %v1028_v53 = vmul.f32 0.00390625, %v1027_v25  ;;  %v1029_v32 = vmul.f32 %v958_v20, %v958_v20 }
 0x287   :  { %v1030_v13 = vsub.f32 %v1028_v53, %v1029_v32 }
 0x289   :  { %v1031_v41 = vmax.f32 %v1030_v13, 0.0 }
 0x28b   :  { %v1033_v31 = vadd.f32 1e-05, %v1031_v41 }
 0x28d   :  { %2219 = vrsqrt.f32 %v1033_v31 }
 0x297   :  { %v2220_v37 = vpop.eup %2219 }
 0x298   :  { %v1035_v40 = vmul.f32 %v2220_v37, %v1032_v38 }
 0x29a   :  { %v1037_v63 = vmul.f32 %v1035_v40, %v958_v20  ;;  %v1043_v60 = vrot.slane %v1035_v40, %v2612_v0 }
 0x29c   :  { %v1038_v48 = vsub.f32 %v1036_v36, %v1037_v63  ;;  %v1074_v46 = vmul.f32 %v1043_v60, %v909_v2  ;;  %v1045_v47 = vmul.f32 %v1043_v60, %v2763_v26  ;;  %v1046_v49 = vmul.f32 %v1043_v60, %v2767_v30 }
 0x29d   :  { %v1047_v51 = vmul.f32 %v2761_v52, %v1043_v60  ;;  %v1048_v54 = vmul.f32 %v2765_v29, %v1043_v60  ;;  %v1049_v55 = vmul.f32 %v1043_v60, %v2783_v34  ;;  %v1050_v56 = vmul.f32 %v1043_v60, %v2790_v7 }
 0x29e   :  { %v1081_v22 = vrot.slane %v1038_v48, %v2612_v0  ;;  %v1051_v57 = vmul.f32 %v2780_v3, %v1043_v60  ;;  %v1052_v62 = vmul.f32 %v2788_v61, %v1043_v60  ;;  %v1053_v2 = vmul.f32 %v1043_v60, %v2803_v8 }
 0x29f   :  { %v1054_v26 = vmul.f32 %v1043_v60, %v2810_v44  ;;  %v1055_v30 = vmul.f32 %v2800_v12, %v1043_v60  ;;  %v1056_v52 = vmul.f32 %v2808_v42, %v1043_v60  ;;  %v1057_v29 = vmul.f32 %v1043_v60, %v2823_v45 }
 0x2a0   :  { %v2937_v6 = vadd.f32 %v1081_v22, %v1074_v46  ;;  %v1058_v34 = vmul.f32 %v1043_v60, %v2830_v4  ;;  %v1059_v7 = vmul.f32 %v2820_v17, %v1043_v60  ;;  %v1060_v3 = vmul.f32 %v2828_v1, %v1043_v60 }
 0x2a1   :  { %v1061_v61 = vmul.f32 %v1043_v60, %v2843_v28  ;;  %v1062_v8 = vmul.f32 %v1043_v60, %v2850_v5  ;;  %v1063_v44 = vmul.f32 %v2840_v21, %v1043_v60  ;;  %v1064_v12 = vmul.f32 %v2848_v50, %v1043_v60 }
 0x2a2   :  { %v1065_v42 = vmul.f32 %v1043_v60, %v2863_v23  ;;  %v1066_v45 = vmul.f32 %v1043_v60, %v2870_v35  ;;  %v1067_v14 = vmul.f32 %v2860_v27, %v1043_v60  ;;  %v1068_v4 = vmul.f32 %v2868_v39, %v1043_v60 }
 0x2a3   :  { %v1069_v17 = vmul.f32 %v1043_v60, %v2883_v10  ;;  %v1070_v1 = vmul.f32 %v1043_v60, %v2890_v11  ;;  %v1071_v28 = vmul.f32 %v2880_v16, %v1043_v60  ;;  %v1072_v5 = vmul.f32 %v2888_v9, %v1043_v60 }
 0x2a4   :  { %v1073_v21 = vmul.f32 %v1043_v60, %v2903_v33  ;;  %v1075_v50 = vmul.f32 %v2900_v43, %v1043_v60  ;;  %v1076_v23 = vmul.f32 %v2908_v59, %v1043_v60  ;;  %v1083_v15 = vadd.f32 %v1081_v22, %v1045_v47 }
 0x2a5   :  { %v1084_v35 = vadd.f32 %v1081_v22, %v1046_v49  ;;  %v1085_v18 = vadd.f32 %v1081_v22, %v1047_v51  ;;  %v1086_v27 = vadd.f32 %v1081_v22, %v1048_v54  ;;  %v1087_v19 = vadd.f32 %v1081_v22, %v1049_v55 }
 0x2a6   :  { %v1088_v39 = vadd.f32 %v1081_v22, %v1050_v56  ;;  %v1089_v20 = vadd.f32 %v1081_v22, %v1051_v57  ;;  %v1090_v10 = vadd.f32 %v1081_v22, %v1052_v62  ;;  %v1091_v25 = vadd.f32 %v1081_v22, %v1053_v2 }
 0x2a7   :  { %v1092_v11 = vadd.f32 %v1081_v22, %v1054_v26  ;;  %v1093_v53 = vadd.f32 %v1081_v22, %v1055_v30  ;;  %v1094_v16 = vadd.f32 %v1081_v22, %v1056_v52  ;;  %v2957_v32 = vadd.f32 %v1081_v22, %v1057_v29 }
 0x2a8   :  { %v2959_v9 = vadd.f32 %v1081_v22, %v1058_v34  ;;  %v2961_v33 = vadd.f32 %v1081_v22, %v1059_v7  ;;  %v2963_v43 = vadd.f32 %v1081_v22, %v1060_v3  ;;  %v2965_v59 = vadd.f32 %v1081_v22, %v1061_v61 }
 0x2a9   :  { %v2967_v13 = vadd.f32 %v1081_v22, %v1062_v8  ;;  %v1101_v41 = vadd.f32 %v1081_v22, %v1063_v44  ;;  %v1102_v31 = vadd.f32 %v1081_v22, %v1064_v12  ;;  %v1103_v38 = vadd.f32 %v1081_v22, %v1065_v42 }
 0x2aa   :  { %v1104_v37 = vadd.f32 %v1081_v22, %v1066_v45  ;;  %v1105_v40 = vadd.f32 %v1081_v22, %v1067_v14  ;;  %v1106_v36 = vadd.f32 %v1081_v22, %v1068_v4  ;;  %v1107_v63 = vadd.f32 %v1081_v22, %v1069_v17 }
 0x2ab   :  { %v1108_v60 = vadd.f32 %v1081_v22, %v1070_v1  ;;  %v1109_v48 = vadd.f32 %v1081_v22, %v1071_v28  ;;  %v1110_v46 = vadd.f32 %v1081_v22, %v1072_v5  ;;  %v1111_v47 = vadd.f32 %v1081_v22, %v1073_v21 }
 0x2ac   :  { %v1113_v49 = vadd.f32 %v1081_v22, %v1075_v50  ;;  %v1114_v51 = vadd.f32 %v1081_v22, %v1076_v23  ;;  %v1115_v54 = vmax.f32 %v1083_v15, 0.0  ;;  %v1116_v55 = vmax.f32 %v1084_v35, 0.0 }
 0x2ad   :  { %v1133_v56 = vmax.f32 %v1101_v41, 0.0  ;;  %v1134_v57 = vmax.f32 %v1102_v31, 0.0  ;;  %v1117_v62 = vmax.f32 %v1085_v18, 0.0  ;;  %v1118_v2 = vmax.f32 %v1086_v27, 0.0 }
 0x2ae   :  { %v1147_v26 = vpack.c.bf16 %v1116_v55, %v1115_v54  ;;  %v1135_v30 = vmax.f32 %v1103_v38, 0.0  ;;  %v1136_v52 = vmax.f32 %v1104_v37, 0.0  ;;  %v1119_v29 = vmax.f32 %v1087_v19, 0.0 }
 0x2af   :  { %v1156_v34 = vpack.c.bf16 %v1134_v57, %v1133_v56  ;;  %v1148_v7 = vpack.c.bf16 %v1118_v2, %v1117_v62  ;;  %v1120_v3 = vmax.f32 %v1088_v39, 0.0  ;;  %v1137_v61 = vmax.f32 %v1105_v40, 0.0 }
 0x2b0   :  { %1292 = vmatmul.mubr.bf16.vlgmr.msra.gmra.mrb[32].mxu0 %v1147_v26  ;;  %v1157_v8 = vpack.c.bf16 %v1136_v52, %v1135_v30  ;;  %v1138_v44 = vmax.f32 %v1106_v36, 0.0  ;;  %v1121_v12 = vmax.f32 %v1089_v20, 0.0  ;;  %v1122_v42 = vmax.f32 %v1090_v10, 0.0 }
 0x2b1   :  { %1382 = vmatmul.mubr.bf16.vlgmr.msra.gmra.mrb[32].mxu1 %v1156_v34  ;;  %1301 = vmatprep.mubr.bf16.mxu0 %v3330_v24  ;;  %v1149_v22 = vpack.c.bf16 %v1120_v3, %v1119_v29  ;;  %v1139_v45 = vmax.f32 %v1107_v63, 0.0  ;;  %v1140_v14 = vmax.f32 %v1108_v60, 0.0  ;;  %v1123_v4 = vmax.f32 %v1091_v25, 0.0 }
 0x2b2   :  { %1391 = vmatprep.mubr.bf16.mxu1 %v3330_v24  ;;  %v1158_v17 = vpack.c.bf16 %v1138_v44, %v1137_v61  ;;  %v1150_v1 = vpack.c.bf16 %v1122_v42, %v1121_v12  ;;  %v1124_v28 = vmax.f32 %v1092_v11, 0.0  ;;  %v1141_v5 = vmax.f32 %v1109_v48, 0.0 }
 0x2b3   :  { %v1159_v21 = vpack.c.bf16 %v1140_v14, %v1139_v45  ;;  %v1142_v50 = vmax.f32 %v1110_v46, 0.0  ;;  %v1125_v23 = vmax.f32 %v1093_v53, 0.0  ;;  %v1126_v15 = vmax.f32 %v1094_v16, 0.0 }
 0x2b4   :  { %v1151_v35 = vpack.c.bf16 %v1124_v28, %v1123_v4  ;;  %v1143_v18 = vmax.f32 %v1111_v47, 0.0  ;;  %v1144_v27 = vmax.f32 %v2937_v6, 0.0  ;;  %v1127_v19 = vmax.f32 %v2957_v32, 0.0 }
 0x2b5   :  { %v1160_v39 = vpack.c.bf16 %v1142_v50, %v1141_v5  ;;  %v1152_v20 = vpack.c.bf16 %v1126_v15, %v1125_v23  ;;  %v1128_v10 = vmax.f32 %v2959_v9, 0.0  ;;  %v1145_v25 = vmax.f32 %v1113_v49, 0.0 }
 0x2b6   :  { %v1161_v41 = vpack.c.bf16 %v1144_v27, %v1143_v18  ;;  %v1146_v31 = vmax.f32 %v1114_v51, 0.0  ;;  %v1129_v11 = vmax.f32 %v2961_v33, 0.0  ;;  %v1130_v38 = vmax.f32 %v2963_v43, 0.0 }
 0x2b7   :  { %v1153_v37 = vpack.c.bf16 %v1128_v10, %v1127_v19  ;;  %v1131_v53 = vmax.f32 %v2965_v59, 0.0  ;;  %v1132_v16 = vmax.f32 %v2967_v13, 0.0 }
 0x2b8   :  { %1302 = vmatmul.mubr.bf16.gmra.mrb[36].mxu0 %v1148_v7  ;;  %v1162_v6 = vpack.c.bf16 %v1146_v31, %v1145_v25  ;;  %v1154_v40 = vpack.c.bf16 %v1130_v38, %v1129_v11 }
 0x2b9   :  { %1392 = vmatmul.mubr.bf16.gmra.mrb[36].mxu1 %v1157_v8  ;;  %1311 = vmatprep.mubr.bf16.mxu0 %v3330_v24  ;;  %v1155_v32 = vpack.c.bf16 %v1132_v16, %v1131_v53 }
 0x2ba   :  { %1401 = vmatprep.mubr.bf16.mxu1 %v3330_v24 }
 0x2c0   :  { %1312 = vmatmul.mubr.bf16.gmra.mrb[40].mxu0 %v1149_v22 }
 0x2c1   :  { %1402 = vmatmul.mubr.bf16.gmra.mrb[40].mxu1 %v1158_v17  ;;  %1321 = vmatprep.mubr.bf16.mxu0 %v3330_v24 }
 0x2c2   :  { %1411 = vmatprep.mubr.bf16.mxu1 %v3330_v24 }
 0x2c8   :  { %1322 = vmatmul.mubr.bf16.gmra.mrb[44].mxu0 %v1150_v1 }
 0x2c9   :  { %1412 = vmatmul.mubr.bf16.gmra.mrb[44].mxu1 %v1159_v21  ;;  %1331 = vmatprep.mubr.bf16.mxu0 %v3330_v24 }
 0x2ca   :  { %1421 = vmatprep.mubr.bf16.mxu1 %v3330_v24 }
 0x2d0   :  { %1332 = vmatmul.mubr.bf16.gmra.mrb[48].mxu0 %v1151_v35 }
 0x2d1   :  { %1422 = vmatmul.mubr.bf16.gmra.mrb[48].mxu1 %v1160_v39  ;;  %1341 = vmatprep.mubr.bf16.mxu0 %v3330_v24 }
 0x2d2   :  { %1431 = vmatprep.mubr.bf16.mxu1 %v3330_v24 }
 0x2d8   :  { %1342 = vmatmul.mubr.bf16.gmra.mrb[52].mxu0 %v1152_v20 }
 0x2d9   :  { %1432 = vmatmul.mubr.bf16.gmra.mrb[52].mxu1 %v1161_v41  ;;  %1351 = vmatprep.mubr.bf16.mxu0 %v3330_v24 }
 0x2da   :  { %1441 = vmatprep.mubr.bf16.mxu1 %v3330_v24 }
 0x2e0   :  { %1352 = vmatmul.mubr.bf16.gmra.mrb[56].mxu0 %v1153_v37 }
 0x2e1   :  { %1442 = vmatmul.mubr.bf16.gmra.mrb[56].mxu1 %v1162_v6  ;;  %1361 = vmatprep.mubr.bf16.mxu0 %v3330_v24 }
 0x2e8   :  { %1362 = vmatmul.mubr.bf16.gmra.mrb[60].mxu0 %v1154_v40 }
 0x2e9   :  { %1371 = vmatprep.mubr.bf16.mxu0 %v3330_v24 }
 0x2f0   :  { %1372 = vmatmul.mubr.bf16.gmra.mrb[64].mxu0 %v1155_v32 }
 0x383   :  { %v1293_v9 = vpop.f32.mrb[32].mxu0 }
 0x384   :  { %v2990_v33 = vpop.f32.mrb[32].mxu1  ;;  %v1295_v43 = vpop.f32.mrb[33].mxu0  ;;  %v1528_v36 = vmul.f32 %v1293_v9, %v1293_v9 }
 0x385   :  { %v2992_v59 = vpop.f32.mrb[33].mxu1  ;;  %v1297_v13 = vpop.f32.mrb[34].mxu0  ;;  %v1529_v49 = vmul.f32 %v1295_v43, %v1295_v43 }
 0x386   :  { %v1452_v63 = vadd.f32 %v1297_v13, %v1293_v9  ;;  %v1530_v60 = vmul.f32 %v1297_v13, %v1297_v13  ;;  %v1731_v48 = vmax.f32 %v1293_v9, %v1297_v13  ;;  %v2994_v46 = vpop.f32.mrb[34].mxu1  ;;  %v1299_v47 = vpop.f32.mrb[35].mxu0  ;;  %v1815_v51 = vmin.f32 %v1293_v9, %v1297_v13 }
 0x387   :  { %v1858_v54 = vmin.f32 %v2994_v46, %v2990_v33  ;;  %v1774_v55 = vmax.f32 %v2994_v46, %v2990_v33  ;;  %v3000_v56 = vpop.f32.mrb[35].mxu1  ;;  %v1489_v62 = vadd.f32 %v1299_v47, %v1295_v43  ;;  %v1531_v2 = vmul.f32 %v1299_v47, %v1299_v47 }
 0x388   :  { %v1592_v57 = vadd.f32 %v1530_v60, %v1528_v36  ;;  %v1752_v26 = vmax.f32 %v1295_v43, %v1299_v47  ;;  %v1836_v30 = vmin.f32 %v1295_v43, %v1299_v47  ;;  %v1879_v52 = vmin.f32 %v3000_v56, %v2992_v59 }
 0x389   :  { %v1795_v29 = vmax.f32 %v3000_v56, %v2992_v59  ;;  %v1629_v34 = vadd.f32 %v1531_v2, %v1529_v49 }
 0x38b   :  { %v1303_v7 = vpop.f32.mrb[36].mxu0 }
 0x38c   :  { %v1453_v3 = vadd.f32 %v1452_v63, %v1303_v7  ;;  %v1532_v61 = vmul.f32 %v1303_v7, %v1303_v7  ;;  %v1732_v8 = vmax.f32 %v1731_v48, %v1303_v7  ;;  %v1816_v44 = vmin.f32 %v1815_v51, %v1303_v7  ;;  %v3006_v12 = vpop.f32.mrb[36].mxu1  ;;  %v1305_v42 = vpop.f32.mrb[37].mxu0 }
 0x38d   :  { %v1859_v22 = vmin.f32 %v1858_v54, %v3006_v12  ;;  %v1775_v45 = vmax.f32 %v1774_v55, %v3006_v12  ;;  %v1490_v14 = vadd.f32 %v1489_v62, %v1305_v42  ;;  %v3010_v4 = vpop.f32.mrb[37].mxu1  ;;  %v1307_v17 = vpop.f32.mrb[38].mxu0  ;;  %v1533_v28 = vmul.f32 %v1305_v42, %v1305_v42 }
 0x38e   :  { %v1593_v1 = vadd.f32 %v1592_v57, %v1532_v61  ;;  %v1753_v5 = vmax.f32 %v1752_v26, %v1305_v42  ;;  %v1837_v21 = vmin.f32 %v1836_v30, %v1305_v42  ;;  %v3012_v50 = vpop.f32.mrb[38].mxu1  ;;  %v1309_v23 = vpop.f32.mrb[39].mxu0  ;;  %v1880_v15 = vmin.f32 %v1879_v52, %v3010_v4 }
 0x38f   :  { %v1796_v35 = vmax.f32 %v1795_v29, %v3010_v4  ;;  %v1454_v18 = vadd.f32 %v1453_v3, %v1307_v17  ;;  %v3016_v27 = vpop.f32.mrb[39].mxu1  ;;  %v1630_v19 = vadd.f32 %v1629_v34, %v1533_v28  ;;  %v1534_v39 = vmul.f32 %v1307_v17, %v1307_v17 }
 0x390   :  { %v1733_v20 = vmax.f32 %v1732_v8, %v1307_v17  ;;  %v1817_v10 = vmin.f32 %v1816_v44, %v1307_v17  ;;  %v1860_v25 = vmin.f32 %v1859_v22, %v3012_v50  ;;  %v1776_v41 = vmax.f32 %v1775_v45, %v3012_v50 }
 0x391   :  { %v1491_v31 = vadd.f32 %v1490_v14, %v1309_v23  ;;  %v1594_v11 = vadd.f32 %v1593_v1, %v1534_v39  ;;  %v1535_v38 = vmul.f32 %v1309_v23, %v1309_v23  ;;  %v1754_v37 = vmax.f32 %v1753_v5, %v1309_v23 }
 0x392   :  { %v1838_v53 = vmin.f32 %v1837_v21, %v1309_v23  ;;  %v1881_v16 = vmin.f32 %v1880_v15, %v3016_v27  ;;  %v1797_v6 = vmax.f32 %v1796_v35, %v3016_v27 }
 0x393   :  { %v1313_v40 = vpop.f32.mrb[40].mxu0  ;;  %v1631_v32 = vadd.f32 %v1630_v19, %v1535_v38 }
 0x394   :  { %v1455_v9 = vadd.f32 %v1454_v18, %v1313_v40  ;;  %v1536_v43 = vmul.f32 %v1313_v40, %v1313_v40  ;;  %v1734_v13 = vmax.f32 %v1733_v20, %v1313_v40  ;;  %v3022_v36 = vpop.f32.mrb[40].mxu1  ;;  %v1315_v63 = vpop.f32.mrb[41].mxu0  ;;  %v1818_v60 = vmin.f32 %v1817_v10, %v1313_v40 }
 0x395   :  { %v1861_v48 = vmin.f32 %v1860_v25, %v3022_v36  ;;  %v1777_v47 = vmax.f32 %v1776_v41, %v3022_v36  ;;  %v3026_v49 = vpop.f32.mrb[41].mxu1  ;;  %v1317_v51 = vpop.f32.mrb[42].mxu0  ;;  %v1492_v55 = vadd.f32 %v1491_v31, %v1315_v63  ;;  %v1537_v57 = vmul.f32 %v1315_v63, %v1315_v63 }
 0x396   :  { %v1595_v54 = vadd.f32 %v1594_v11, %v1536_v43  ;;  %v1755_v62 = vmax.f32 %v1754_v37, %v1315_v63  ;;  %v3028_v2 = vpop.f32.mrb[42].mxu1  ;;  %v1319_v26 = vpop.f32.mrb[43].mxu0  ;;  %v1839_v30 = vmin.f32 %v1838_v53, %v1315_v63  ;;  %v1882_v52 = vmin.f32 %v1881_v16, %v3026_v49 }
 0x397   :  { %v1798_v29 = vmax.f32 %v1797_v6, %v3026_v49  ;;  %v3032_v34 = vpop.f32.mrb[43].mxu1  ;;  %v1632_v7 = vadd.f32 %v1631_v32, %v1537_v57  ;;  %v1456_v3 = vadd.f32 %v1455_v9, %v1317_v51  ;;  %v1538_v61 = vmul.f32 %v1317_v51, %v1317_v51 }
 0x398   :  { %3355 = vst [vmem:[#allocation7_spill] sm:$0xff] %v3032_v34  ;;  %v1735_v8 = vmax.f32 %v1734_v13, %v1317_v51  ;;  %v1819_v44 = vmin.f32 %v1818_v60, %v1317_v51  ;;  %v1862_v42 = vmin.f32 %v1861_v48, %v3028_v2  ;;  %v1778_v22 = vmax.f32 %v1777_v47, %v3028_v2 }
 0x399   :  { %v1596_v45 = vadd.f32 %v1595_v54, %v1538_v61  ;;  %v1493_v14 = vadd.f32 %v1492_v55, %v1319_v26  ;;  %v1539_v17 = vmul.f32 %v1319_v26, %v1319_v26  ;;  %v1756_v1 = vmax.f32 %v1755_v62, %v1319_v26 }
 0x39a   :  { %v1840_v28 = vmin.f32 %v1839_v30, %v1319_v26  ;;  %v1883_v5 = vmin.f32 %v1882_v52, %v3032_v34  ;;  %v1799_v21 = vmax.f32 %v1798_v29, %v3032_v34  ;;  %v3148_v24 = vmul.f32 %v3028_v2, %v3028_v2 }
 0x39b   :  { %v1323_v23 = vpop.f32.mrb[44].mxu0  ;;  %v1633_v15 = vadd.f32 %v1632_v7, %v1539_v17 }
 0x39c   :  { %v1457_v35 = vadd.f32 %v1456_v3, %v1323_v23  ;;  %v1540_v18 = vmul.f32 %v1323_v23, %v1323_v23  ;;  %v1736_v19 = vmax.f32 %v1735_v8, %v1323_v23  ;;  %v3038_v39 = vpop.f32.mrb[44].mxu1  ;;  %v1325_v20 = vpop.f32.mrb[45].mxu0  ;;  %v1820_v10 = vmin.f32 %v1819_v44, %v1323_v23 }
 0x39d   :  { %v1863_v25 = vmin.f32 %v1862_v42, %v3038_v39  ;;  %v1779_v41 = vmax.f32 %v1778_v22, %v3038_v39  ;;  %v3042_v31 = vpop.f32.mrb[45].mxu1  ;;  %v1327_v11 = vpop.f32.mrb[46].mxu0  ;;  %v1494_v37 = vadd.f32 %v1493_v14, %v1325_v20  ;;  %v1541_v53 = vmul.f32 %v1325_v20, %v1325_v20 }
 0x39e   :  { %3356 = vst [vmem:[#allocation8_spill] sm:$0xff] %v3042_v31  ;;  %v1597_v38 = vadd.f32 %v1596_v45, %v1540_v18  ;;  %v1757_v16 = vmax.f32 %v1756_v1, %v1325_v20  ;;  %v3044_v6 = vpop.f32.mrb[46].mxu1  ;;  %v1329_v40 = vpop.f32.mrb[47].mxu0  ;;  %v1841_v32 = vmin.f32 %v1840_v28, %v1325_v20  ;;  %v1884_v9 = vmin.f32 %v1883_v5, %v3042_v31 }
 0x39f   :  { %v1800_v43 = vmax.f32 %v1799_v21, %v3042_v31  ;;  %v3048_v13 = vpop.f32.mrb[47].mxu1  ;;  %v1634_v63 = vadd.f32 %v1633_v15, %v1541_v53  ;;  %v1458_v60 = vadd.f32 %v1457_v35, %v1327_v11  ;;  %v1542_v48 = vmul.f32 %v1327_v11, %v1327_v11 }
 0x3a0   :  { %3357 = vst [vmem:[#allocation9_spill] sm:$0xff] %v3048_v13  ;;  %v1737_v47 = vmax.f32 %v1736_v19, %v1327_v11  ;;  %v1821_v51 = vmin.f32 %v1820_v10, %v1327_v11  ;;  %v1864_v54 = vmin.f32 %v1863_v25, %v3044_v6  ;;  %v1780_v55 = vmax.f32 %v1779_v41, %v3044_v6 }
 0x3a1   :  { %v1598_v57 = vadd.f32 %v1597_v38, %v1542_v48  ;;  %v1495_v62 = vadd.f32 %v1494_v37, %v1329_v40  ;;  %v1543_v26 = vmul.f32 %v1329_v40, %v1329_v40  ;;  %v1758_v30 = vmax.f32 %v1757_v16, %v1329_v40 }
 0x3a2   :  { %v1842_v52 = vmin.f32 %v1841_v32, %v1329_v40  ;;  %v1885_v29 = vmin.f32 %v1884_v9, %v3048_v13  ;;  %v1801_v7 = vmax.f32 %v1800_v43, %v3048_v13  ;;  %v3058_v14 = vmul.f32 %v2990_v33, %v2990_v33 }
 0x3a3   :  { %v1333_v3 = vpop.f32.mrb[48].mxu0  ;;  %v1635_v61 = vadd.f32 %v1634_v63, %v1543_v26  ;;  %v3068_v10 = vmul.f32 %v2992_v59, %v2992_v59  ;;  %v3076_v32 = vmul.f32 %v2994_v46, %v2994_v46 }
 0x3a4   :  { %v1459_v8 = vadd.f32 %v1458_v60, %v1333_v3  ;;  %v1544_v44 = vmul.f32 %v1333_v3, %v1333_v3  ;;  %v1738_v42 = vmax.f32 %v1737_v47, %v1333_v3  ;;  %v3054_v22 = vpop.f32.mrb[48].mxu1  ;;  %v1335_v45 = vpop.f32.mrb[49].mxu0  ;;  %v1822_v17 = vmin.f32 %v1821_v51, %v1333_v3 }
 0x3a5   :  { %3358 = vst [vmem:[#allocation10_spill] sm:$0xff] %v3054_v22  ;;  %v1865_v1 = vmin.f32 %v1864_v54, %v3054_v22  ;;  %v1781_v28 = vmax.f32 %v1780_v55, %v3054_v22  ;;  %v3062_v5 = vpop.f32.mrb[49].mxu1  ;;  %v1337_v21 = vpop.f32.mrb[50].mxu0  ;;  %v1496_v15 = vadd.f32 %v1495_v62, %v1335_v45  ;;  %v1545_v35 = vmul.f32 %v1335_v45, %v1335_v45 }
 0x3a6   :  { %3359 = vst [vmem:[#allocation11_spill] sm:$0xff] %v3062_v5  ;;  %v1599_v23 = vadd.f32 %v1598_v57, %v1544_v44  ;;  %v1759_v18 = vmax.f32 %v1758_v30, %v1335_v45  ;;  %v3064_v19 = vpop.f32.mrb[50].mxu1  ;;  %v1339_v20 = vpop.f32.mrb[51].mxu0  ;;  %v1843_v25 = vmin.f32 %v1842_v52, %v1335_v45  ;;  %v1886_v41 = vmin.f32 %v1885_v29, %v3062_v5 }
 0x3a7   :  { %v1802_v11 = vmax.f32 %v1801_v7, %v3062_v5  ;;  %v3072_v38 = vpop.f32.mrb[51].mxu1  ;;  %v1636_v37 = vadd.f32 %v1635_v61, %v1545_v35  ;;  %v1460_v53 = vadd.f32 %v1459_v8, %v1337_v21  ;;  %v1546_v16 = vmul.f32 %v1337_v21, %v1337_v21 }
 0x3a8   :  { %3360 = vst [vmem:[#allocation12_spill] sm:$0xff] %v3072_v38  ;;  %v1739_v40 = vmax.f32 %v1738_v42, %v1337_v21  ;;  %v1823_v9 = vmin.f32 %v1822_v17, %v1337_v21  ;;  %v1866_v43 = vmin.f32 %v1865_v1, %v3064_v19  ;;  %v1782_v63 = vmax.f32 %v1781_v28, %v3064_v19 }
 0x3a9   :  { %v1600_v60 = vadd.f32 %v1599_v23, %v1546_v16  ;;  %v1497_v48 = vadd.f32 %v1496_v15, %v1339_v20  ;;  %v1547_v47 = vmul.f32 %v1339_v20, %v1339_v20  ;;  %v1760_v51 = vmax.f32 %v1759_v18, %v1339_v20 }
 0x3aa   :  { %v3082_v54 = vmul.f32 %v3000_v56, %v3000_v56  ;;  %v1844_v55 = vmin.f32 %v1843_v25, %v1339_v20  ;;  %v1887_v57 = vmin.f32 %v1886_v41, %v3072_v38  ;;  %v1803_v62 = vmax.f32 %v1802_v11, %v3072_v38 }
 0x3ab   :  { %v1343_v26 = vpop.f32.mrb[52].mxu0  ;;  %v1637_v30 = vadd.f32 %v1636_v37, %v1547_v47  ;;  %v3090_v8 = vmul.f32 %v3006_v12, %v3006_v12  ;;  %v3100_v20 = vmul.f32 %v3010_v4, %v3010_v4 }
 0x3ac   :  { %v1461_v52 = vadd.f32 %v1460_v53, %v1343_v26  ;;  %v1548_v29 = vmul.f32 %v1343_v26, %v1343_v26  ;;  %v1740_v7 = vmax.f32 %v1739_v40, %v1343_v26  ;;  %v3086_v3 = vpop.f32.mrb[52].mxu1  ;;  %v1345_v61 = vpop.f32.mrb[53].mxu0  ;;  %v1824_v44 = vmin.f32 %v1823_v9, %v1343_v26 }
 0x3ad   :  { %v1867_v42 = vmin.f32 %v1866_v43, %v3086_v3  ;;  %v1783_v45 = vmax.f32 %v1782_v63, %v3086_v3  ;;  %v3094_v17 = vpop.f32.mrb[53].mxu1  ;;  %v1347_v1 = vpop.f32.mrb[54].mxu0  ;;  %v1498_v21 = vadd.f32 %v1497_v48, %v1345_v61  ;;  %v1549_v23 = vmul.f32 %v1345_v61, %v1345_v61 }
 0x3ae   :  { %3361 = vst [vmem:[#allocation13_spill] sm:$0xff] %v3094_v17  ;;  %v1601_v28 = vadd.f32 %v1600_v60, %v1548_v29  ;;  %v1761_v15 = vmax.f32 %v1760_v51, %v1345_v61  ;;  %v3096_v35 = vpop.f32.mrb[54].mxu1  ;;  %v1349_v18 = vpop.f32.mrb[55].mxu0  ;;  %v1845_v25 = vmin.f32 %v1844_v55, %v1345_v61  ;;  %v1888_v41 = vmin.f32 %v1887_v57, %v3094_v17 }
 0x3af   :  { %3362 = vst [vmem:[#allocation14_spill] sm:$0xff] %v3096_v35  ;;  %v1804_v11 = vmax.f32 %v1803_v62, %v3094_v17  ;;  %v3104_v37 = vpop.f32.mrb[55].mxu1  ;;  %v1638_v53 = vadd.f32 %v1637_v30, %v1549_v23  ;;  %v1462_v16 = vadd.f32 %v1461_v52, %v1347_v1  ;;  %v1550_v40 = vmul.f32 %v1347_v1, %v1347_v1 }
 0x3b0   :  { %3363 = vst [vmem:[#allocation15_spill] sm:$0xff] %v3104_v37  ;;  %v1741_v9 = vmax.f32 %v1740_v7, %v1347_v1  ;;  %v3108_v43 = vmul.f32 %v3012_v50, %v3012_v50  ;;  %v1825_v63 = vmin.f32 %v1824_v44, %v1347_v1  ;;  %v1868_v60 = vmin.f32 %v1867_v42, %v3096_v35 }
 0x3b1   :  { %v1784_v48 = vmax.f32 %v1783_v45, %v3096_v35  ;;  %v1602_v47 = vadd.f32 %v1601_v28, %v1550_v40  ;;  %v1499_v51 = vadd.f32 %v1498_v21, %v1349_v18  ;;  %v1551_v55 = vmul.f32 %v1349_v18, %v1349_v18 }
 0x3b2   :  { %v1762_v57 = vmax.f32 %v1761_v15, %v1349_v18  ;;  %v3114_v62 = vmul.f32 %v3016_v27, %v3016_v27  ;;  %v1846_v26 = vmin.f32 %v1845_v25, %v1349_v18  ;;  %v1889_v30 = vmin.f32 %v1888_v41, %v3104_v37 }
 0x3b3   :  { %v1805_v52 = vmax.f32 %v1804_v11, %v3104_v37  ;;  %v1353_v29 = vpop.f32.mrb[56].mxu0  ;;  %v1639_v7 = vadd.f32 %v1638_v53, %v1551_v55  ;;  %v3122_v28 = vmul.f32 %v3022_v36, %v3022_v36  ;;  %v3136_v55 = vmul.f32 %v3026_v49, %v3026_v49 }
 0x3b4   :  { %3364 = vst [vmem:[#allocation16_spill] sm:$0xff] %v3114_v62  ;;  %v1463_v61 = vadd.f32 %v1462_v16, %v1353_v29  ;;  %v1552_v44 = vmul.f32 %v1353_v29, %v1353_v29  ;;  %v1742_v42 = vmax.f32 %v1741_v9, %v1353_v29  ;;  %v3118_v1 = vpop.f32.mrb[56].mxu1  ;;  %v1355_v45 = vpop.f32.mrb[57].mxu0  ;;  %v1826_v21 = vmin.f32 %v1825_v63, %v1353_v29 }
 0x3b5   :  { %3365 = vst [vmem:[#allocation17_spill] sm:$0xff] %v3118_v1  ;;  %v3125_v23 = vmin.f32 %v1868_v60, %v3118_v1  ;;  %v3128_v15 = vmax.f32 %v1784_v48, %v3118_v1  ;;  %v3130_v18 = vpop.f32.mrb[57].mxu1  ;;  %v1357_v25 = vpop.f32.mrb[58].mxu0  ;;  %v1500_v11 = vadd.f32 %v1499_v51, %v1355_v45  ;;  %v1553_v53 = vmul.f32 %v1355_v45, %v1355_v45 }
 0x3b6   :  { %3366 = vst [vmem:[#allocation18_spill] sm:$0xff] %v3130_v18  ;;  %v1603_v41 = vadd.f32 %v1602_v47, %v1552_v44  ;;  %v1763_v16 = vmax.f32 %v1762_v57, %v1355_v45  ;;  %v3132_v40 = vpop.f32.mrb[58].mxu1  ;;  %v1359_v9 = vpop.f32.mrb[59].mxu0  ;;  %3367 = vst [vmem:[#allocation19_spill] sm:$0xff] %v3136_v55  ;;  %v1847_v63 = vmin.f32 %v1846_v26, %v1355_v45 }
 0x3b7   :  { %v3139_v60 = vmin.f32 %v1889_v30, %v3130_v18  ;;  %v3142_v48 = vmax.f32 %v1805_v52, %v3130_v18  ;;  %v3144_v29 = vpop.f32.mrb[59].mxu1  ;;  %v1640_v47 = vadd.f32 %v1639_v7, %v1553_v53  ;;  %v1464_v51 = vadd.f32 %v1463_v61, %v1357_v25 }
 0x3b8   :  { %v1554_v44 = vmul.f32 %v1357_v25, %v1357_v25  ;;  %v1743_v57 = vmax.f32 %v1742_v42, %v1357_v25  ;;  %v1827_v0 = vmin.f32 %v1826_v21, %v1357_v25  ;;  %v1501_v52 = vadd.f32 %v1500_v11, %v1359_v9 }
 0x3b9   :  { %v1555_v58 = vmul.f32 %v1359_v9, %v1359_v9  ;;  %v1764_v18 = vmax.f32 %v1763_v16, %v1359_v9  ;;  %v3156_v7 = vmul.f32 %v3032_v34, %v3032_v34  ;;  %v1848_v61 = vmin.f32 %v1847_v63, %v1359_v9 }
 0x3ba   :  { %v1604_v45 = vadd.f32 %v1603_v41, %v1554_v44 }
 0x3bb   :  { %3368 = vst [vmem:[#allocation20_spill] sm:$0xff] %v3156_v7  ;;  %v1363_v25 = vpop.f32.mrb[60].mxu0  ;;  %v1641_v53 = vadd.f32 %v1640_v47, %v1555_v58 }
 0x3bc   :  { %v1465_v26 = vadd.f32 %v1464_v51, %v1363_v25  ;;  %v1556_v37 = vmul.f32 %v1363_v25, %v1363_v25  ;;  %v1744_v30 = vmax.f32 %v1743_v57, %v1363_v25  ;;  %v1365_v41 = vpop.f32.mrb[61].mxu0  ;;  %v1828_v11 = vmin.f32 %v1827_v0, %v1363_v25 }
 0x3bd   :  { %v1502_v44 = vadd.f32 %v1501_v52, %v1365_v41  ;;  %v1557_v16 = vmul.f32 %v1365_v41, %v1365_v41  ;;  %v1765_v17 = vmax.f32 %v1764_v18, %v1365_v41  ;;  %v1367_v1 = vpop.f32.mrb[62].mxu0  ;;  %v1849_v35 = vmin.f32 %v1848_v61, %v1365_v41 }
 0x3be   :  { %v1605_v38 = vadd.f32 %v1604_v45, %v1556_v37  ;;  %v1466_v9 = vadd.f32 %v1465_v26, %v1367_v1  ;;  %v1558_v63 = vmul.f32 %v1367_v1, %v1367_v1  ;;  %v1369_v5 = vpop.f32.mrb[63].mxu0  ;;  %v1745_v7 = vmax.f32 %v1744_v30, %v1367_v1 }
 0x3bf   :  { %v1642_v42 = vadd.f32 %v1641_v53, %v1557_v16  ;;  %v1829_v55 = vmin.f32 %v1828_v11, %v1367_v1  ;;  %v1503_v21 = vadd.f32 %v1502_v44, %v1369_v5  ;;  %v1559_v58 = vmul.f32 %v1369_v5, %v1369_v5 }
 0x3c0   :  { %v1606_v62 = vadd.f32 %v1605_v38, %v1558_v63  ;;  %v1766_v47 = vmax.f32 %v1765_v17, %v1369_v5  ;;  %v1850_v51 = vmin.f32 %v1849_v35, %v1369_v5  ;;  %v3164_v0 = vmul.f32 %v3038_v39, %v3038_v39 }
 0x3c1   :  { %v3168_v18 = vmul.f32 %v3042_v31, %v3042_v31  ;;  %v1746_v37 = vrot.slane %v1745_v7, 4  ;;  %v1830_v57 = vrot.slane %v1829_v55, 4  ;;  %v3172_v26 = vmul.f32 %v3044_v6, %v3044_v6 }
 0x3c2   :  { %v1643_v1 = vadd.f32 %v1642_v42, %v1559_v58  ;;  %v1767_v30 = vrot.slane %v1766_v47, 4  ;;  %v1851_v38 = vrot.slane %v1850_v51, 4  ;;  %v3176_v5 = vmul.f32 %v3048_v13, %v3048_v13 }
 0x3c3   :  { %3369 = vst [vmem:[#allocation21_spill] sm:$0xff] %v3168_v18  ;;  %3370 = vst [vmem:[#allocation22_spill] sm:$0xff] %v3172_v26  ;;  %v3180_v17 = vmul.f32 %v3054_v22, %v3054_v22  ;;  %v1747_v35 = vmax.f32 %v1745_v7, %v1746_v37  ;;  %v1831_v45 = vmin.f32 %v1829_v55, %v1830_v57  ;;  %v1373_v52 = vpop.f32.mrb[64].mxu0 }
 0x3c4   :  { %3371 = vst [vmem:[#allocation23_spill] sm:$0xff] %v3176_v5  ;;  %v1768_v61 = vmax.f32 %v1766_v47, %v1767_v30  ;;  %v1852_v25 = vmin.f32 %v1850_v51, %v1851_v38  ;;  %v1467_v53 = vadd.f32 %v1466_v9, %v1373_v52  ;;  %v1560_v41 = vmul.f32 %v1373_v52, %v1373_v52  ;;  %v1375_v11 = vpop.f32.mrb[65].mxu0 }
 0x3c5   :  { %3372 = vst [vmem:[#allocation24_spill] sm:$0xff] %v3180_v17  ;;  %v1748_v44 = vrot.slane %v1747_v35, 2  ;;  %v1832_v42 = vrot.slane %v1831_v45, 2  ;;  %v1561_v16 = vmul.f32 %v1375_v11, %v1375_v11  ;;  %v1377_v63 = vpop.f32.mrb[66].mxu0  ;;  %v1504_v58 = vadd.f32 %v1503_v21, %v1375_v11 }
 0x3c6   :  { %v1769_v18 = vrot.slane %v1768_v61, 2  ;;  %v1853_v13 = vrot.slane %v1852_v25, 2  ;;  %v1607_v5 = vadd.f32 %v1606_v62, %v1560_v41  ;;  %v1468_v31 = vadd.f32 %v1467_v53, %v1377_v63  ;;  %v1379_v26 = vpop.f32.mrb[67].mxu0 }
 0x3c7   :  { %v1749_v22 = vmax.f32 %v1747_v35, %v1748_v44  ;;  %v1833_v17 = vmin.f32 %v1831_v45, %v1832_v42  ;;  %v1562_v7 = vmul.f32 %v1377_v63, %v1377_v63  ;;  %v1773_v55 = vmax.f32 %v1373_v52, %v1377_v63 }
 0x3c8   :  { %v1770_v37 = vmax.f32 %v1768_v61, %v1769_v18  ;;  %v3182_v47 = vmin.f32 %v1852_v25, %v1853_v13  ;;  %v1469_v9 = vadd.f32 %v1468_v31, %v2990_v33  ;;  %v1857_v51 = vmin.f32 %v1373_v52, %v1377_v63 }
 0x3c9   :  { %v1750_v57 = vrot.slane %v1749_v22, 1  ;;  %v1834_v30 = vrot.slane %v1833_v17, 1  ;;  %v1608_v38 = vadd.f32 %v1607_v5, %v1562_v7  ;;  %v3373_v21 = vmax.f32 %v3128_v15, %v3132_v40 }
 0x3ca   :  { %v3190_v62 = vmul.f32 %v3064_v19, %v3064_v19  ;;  %v1771_v35 = vrot.slane %v1770_v37, 1  ;;  %v1470_v45 = vadd.f32 %v1469_v9, %v2994_v46  ;;  %v3374_v13 = vmin.f32 %v3125_v23, %v3132_v40 }
 0x3cb   :  { %v1787_v34 = vmax.f32 %v3373_v21, %v1773_v55  ;;  %v3198_v33 = vmul.f32 %v3086_v3, %v3086_v3  ;;  %v1855_v31 = vrot.slane %v3182_v47, 1  ;;  %v1609_v15 = vadd.f32 %v1608_v38, %v3058_v14 }
 0x3cc   :  { %v1871_v18 = vmin.f32 %v3374_v13, %v1857_v51  ;;  %v1505_v5 = vadd.f32 %v1504_v58, %v1379_v26  ;;  %v1751_v52 = vmax.f32 %v1749_v22, %v1750_v57  ;;  %v3202_v61 = vmin.f32 %v1833_v17, %v1834_v30 }
 0x3cd   :  { %v1471_v25 = vadd.f32 %v1470_v45, %v3006_v12  ;;  %v1563_v53 = vmul.f32 %v1379_v26, %v1379_v26  ;;  %v1610_v46 = vadd.f32 %v1609_v15, %v3076_v32  ;;  %v1644_v41 = vadd.f32 %v1643_v1, %v1561_v16 }
 0x3ce   :  { %v1506_v23 = vadd.f32 %v1505_v5, %v2992_v59  ;;  %v1794_v44 = vmax.f32 %v1375_v11, %v1379_v26  ;;  %v3207_v42 = vmax.f32 %v1770_v37, %v1771_v35  ;;  %v1878_v7 = vmin.f32 %v1375_v11, %v1379_v26 }
 0x3cf   :  { %v1472_v63 = vadd.f32 %v1471_v25, %v3012_v50  ;;  %v1788_v55 = vrot.slane %v1787_v34, 4  ;;  %v1611_v14 = vadd.f32 %v1610_v46, %v3090_v8  ;;  %v1645_v17 = vadd.f32 %v1644_v41, %v1563_v53  ;;  %v3379_v53 = vld [vmem:[#allocation10_spill] sm:$0xff] }
 0x3d0   :  { %v1507_v22 = vadd.f32 %v1506_v23, %v3000_v56  ;;  %v3375_v12 = vmax.f32 %v3142_v48, %v3144_v29  ;;  %v3376_v32 = vmin.f32 %v3139_v60, %v3144_v29  ;;  %v1872_v50 = vrot.slane %v1871_v18, 4  ;;  %v3380_v41 = vld [vmem:[#allocation22_spill] sm:$0xff] }
 0x3d1   :  { %v1473_v59 = vadd.f32 %v1472_v63, %v3022_v36  ;;  %v1789_v16 = vmax.f32 %v1787_v34, %v1788_v55  ;;  %v1612_v26 = vadd.f32 %v1611_v14, %v3108_v43  ;;  %v1646_v56 = vadd.f32 %v1645_v17, %v3068_v10 }
 0x3d2   :  { %v1808_v58 = vmax.f32 %v3375_v12, %v1794_v44  ;;  %v1892_v1 = vmin.f32 %v3376_v32, %v1878_v7  ;;  %v1508_v8 = vadd.f32 %v1507_v22, %v3010_v4  ;;  %v1873_v9 = vmin.f32 %v1871_v18, %v1872_v50  ;;  %v3377_v18 = vld [vmem:[#allocation7_spill] sm:$0xff]  ;;  %v3381_v44 = vld [vmem:[#allocation8_spill] sm:$0xff] }
 0x3d3   :  { %v1474_v37 = vadd.f32 %v1473_v59, %v3028_v2  ;;  %v1790_v48 = vrot.slane %v1789_v16, 2  ;;  %v1613_v36 = vadd.f32 %v1612_v26, %v3122_v28  ;;  %v1647_v60 = vadd.f32 %v1646_v56, %v3082_v54  ;;  %v3383_v12 = vld [vmem:[#allocation24_spill] sm:$0xff]  ;;  %v3384_v59 = vld [vmem:[#allocation9_spill] sm:$0xff] }
 0x3d4   :  { %v1809_v11 = vrot.slane %v1808_v58, 4  ;;  %v1893_v51 = vrot.slane %v1892_v1, 4  ;;  %v1509_v57 = vadd.f32 %v1508_v8, %v3016_v27  ;;  %v1874_v38 = vrot.slane %v1873_v9, 2 }
 0x3d5   :  { %v1475_v30 = vadd.f32 %v1474_v37, %v3038_v39  ;;  %v1791_v43 = vmax.f32 %v1789_v16, %v1790_v48  ;;  %v1614_v10 = vadd.f32 %v1613_v36, %v3148_v24  ;;  %v1648_v2 = vadd.f32 %v1647_v60, %v3100_v20  ;;  %v3378_v39 = vld [vmem:[#allocation16_spill] sm:$0xff]  ;;  %v3387_v48 = vld [vmem:[#allocation21_spill] sm:$0xff] }
 0x3d6   :  { %v1810_v34 = vmax.f32 %v1808_v58, %v1809_v11  ;;  %v1894_v4 = vmin.f32 %v1892_v1, %v1893_v51  ;;  %v1510_v21 = vadd.f32 %v1509_v57, %v3026_v49  ;;  %v1875_v13 = vmin.f32 %v1873_v9, %v1874_v38  ;;  %v3385_v1 = vld [vmem:[#allocation20_spill] sm:$0xff]  ;;  %v3386_v11 = vld [vmem:[#allocation11_spill] sm:$0xff] }
 0x3d7   :  { %v1476_v45 = vadd.f32 %v1475_v30, %v3044_v6  ;;  %v1792_v28 = vrot.slane %v1791_v43, 1  ;;  %v1615_v54 = vadd.f32 %v1614_v10, %v3164_v0  ;;  %v1649_v5 = vadd.f32 %v1648_v2, %v3378_v39  ;;  %v3382_v6 = vld [vmem:[#allocation19_spill] sm:$0xff]  ;;  %v3389_v57 = vld [vmem:[#allocation12_spill] sm:$0xff] }
 0x3d8   :  { %v1811_v35 = vrot.slane %v1810_v34, 2  ;;  %v1895_v27 = vrot.slane %v1894_v4, 2  ;;  %v1511_v15 = vadd.f32 %v1510_v21, %v3377_v18  ;;  %v1876_v23 = vrot.slane %v1875_v13, 1  ;;  %v3392_v21 = vld [vmem:[#allocation13_spill] sm:$0xff] }
 0x3d9   :  { %v1477_v46 = vadd.f32 %v1476_v45, %v3379_v53  ;;  %v1793_v24 = vmax.f32 %v1791_v43, %v1792_v28  ;;  %v1616_v20 = vadd.f32 %v1615_v54, %v3380_v41  ;;  %v1650_v7 = vadd.f32 %v1649_v5, %v3382_v6  ;;  %v3391_v43 = vld [vmem:[#allocation17_spill] sm:$0xff] }
 0x3da   :  { %v1812_v25 = vmax.f32 %v1810_v34, %v1811_v35  ;;  %v1896_v49 = vmin.f32 %v1894_v4, %v1895_v27  ;;  %v1512_v63 = vadd.f32 %v1511_v15, %v3381_v44  ;;  %v1877_v0 = vmin.f32 %v1875_v13, %v1876_v23  ;;  %v3390_v34 = vld [vmem:[#allocation23_spill] sm:$0xff] }
 0x3db   :  { %v1478_v14 = vadd.f32 %v1477_v46, %v3064_v19  ;;  %v3240_v17 = vsel %vm1915_vm4, %v1793_v24, %v1751_v52  ;;  %v1617_v58 = vadd.f32 %v1616_v20, %v3383_v12  ;;  %v1651_v16 = vadd.f32 %v1650_v7, %v3385_v1  ;;  %v3393_v27 = vld [vmem:[#allocation15_spill] sm:$0xff] }
 0x3dc   :  { %v1813_v55 = vrot.slane %v1812_v25, 1  ;;  %v1897_v22 = vrot.slane %v1896_v49, 1  ;;  %v1513_v32 = vadd.f32 %v1512_v63, %v3384_v59  ;;  %v1856_v26 = vmin.f32 %v3182_v47, %v1855_v31  ;;  %v3388_v31 = vld [vmem:[#allocation14_spill] sm:$0xff] }
 0x3dd   :  { %v1479_v8 = vadd.f32 %v1478_v14, %v3086_v3  ;;  %v3251_v19 = vsel %vm1915_vm4, %v1877_v0, %v3202_v61  ;;  %v1618_v52 = vadd.f32 %v1617_v58, %v3190_v62  ;;  %v1652_v9 = vadd.f32 %v1651_v16, %v3387_v48 }
 0x3de   :  { %v1814_v50 = vmax.f32 %v1812_v25, %v1813_v55  ;;  %v1898_v56 = vmin.f32 %v1896_v49, %v1897_v22  ;;  %v1514_v37 = vadd.f32 %v1513_v32, %v3386_v11  ;;  %v1581_v47 = vmul.f32 %v3386_v11, %v3386_v11  ;;  %v3394_v25 = vld [vmem:[#allocation18_spill] sm:$0xff] }
 0x3df   :  { %v1480_v3 = vadd.f32 %v1479_v8, %v3388_v31  ;;  %v1586_v61 = vmul.f32 %v3388_v31, %v3388_v31  ;;  %v1619_v62 = vadd.f32 %v1618_v52, %v3198_v33  ;;  %v1653_v30 = vadd.f32 %v1652_v9, %v3390_v34 }
 0x3e0   :  { %v3258_v51 = vsel %vm1915_vm4, %v1814_v50, %v3207_v42  ;;  %v3264_v36 = vsel %vm1915_vm4, %v1898_v56, %v1856_v26  ;;  %v1515_v60 = vadd.f32 %v1514_v37, %v3389_v57  ;;  %v1583_v42 = vmul.f32 %v3389_v57, %v3389_v57 }
 0x3e1   :  { %v1481_v38 = vadd.f32 %v1480_v3, %v3391_v43  ;;  %v1588_v4 = vmul.f32 %v3391_v43, %v3391_v43  ;;  %v1654_v10 = vadd.f32 %v1653_v30, %v1581_v47  ;;  %v1620_v35 = vadd.f32 %v1619_v62, %v1586_v61 }
 0x3e2   :  { %v1516_v2 = vadd.f32 %v1515_v60, %v3392_v21  ;;  %v1585_v45 = vmul.f32 %v3392_v21, %v3392_v21  ;;  %v1590_v28 = vmul.f32 %v3132_v40, %v3132_v40  ;;  %v1587_v39 = vmul.f32 %v3393_v27, %v3393_v27 }
 0x3e3   :  { %v1482_v33 = vadd.f32 %v1481_v38, %v3132_v40  ;;  %v1655_v13 = vadd.f32 %v1654_v10, %v1583_v42  ;;  %v1621_v18 = vadd.f32 %v1620_v35, %v1588_v4  ;;  %v1589_v23 = vmul.f32 %v3394_v25, %v3394_v25 }
 0x3e4   :  { %v1517_v54 = vadd.f32 %v1516_v2, %v3393_v27  ;;  %v1591_v44 = vmul.f32 %v3144_v29, %v3144_v29  ;;  %v2251_v38 = vmov 1966171168   ;;  %v3395_v2 = vld [vmem:[#allocation5_spill] sm:$0xff] }
 0x3e5   :  { %v1483_v15 = vrot.slane %v1482_v33, 4  ;;  %v1656_v5 = vadd.f32 %v1655_v13, %v1585_v45  ;;  %v1622_v46 = vadd.f32 %v1621_v18, %v1590_v28  ;;  %v1683_v4 = vunpack.c.l.s4 %v2251_v38  ;;  %v1674_v13 = vld [vmem:[%s3327_s8] sm:$0x3] }
 0x3e6   :  { %v1518_v53 = vadd.f32 %v1517_v54, %v3394_v25  ;;  %v1706_v54 = vsub.s32 1, %v3395_v2  ;;  %v3397_v25 = vmov 0  }
 0x3e7   :  { %v1484_v24 = vadd.f32 %v1483_v15, %v1482_v33  ;;  %v1623_v41 = vrot.slane %v1622_v46, 4  ;;  %v1657_v40 = vadd.f32 %v1656_v5, %v1587_v39  ;;  %v1684_v10 = vunpack.c.0.s8 %v1683_v4  ;;  %v3396_v15 = vld [vmem:[#allocation6_spill] sm:$0xff] }
 0x3e8   :  { %v1519_v49 = vadd.f32 %v1518_v53, %v3144_v29 }
 0x3e9   :  { %v1485_v20 = vrot.slane %v1484_v24, 2  ;;  %v1624_v6 = vadd.f32 %v1623_v41, %v1622_v46  ;;  %v1658_v7 = vadd.f32 %v1657_v40, %v1589_v23  ;;  %v1687_v35 = vsub.s32 %v1684_v10, %v3395_v2 }
 0x3ea   :  { %v1520_v63 = vrot.slane %v1519_v49, 4 }
 0x3eb   :  { %v1486_v55 = vadd.f32 %v1485_v20, %v1484_v24  ;;  %v1625_v0 = vrot.slane %v1624_v6, 2  ;;  %v1659_v22 = vadd.f32 %v1658_v7, %v1591_v44  ;;  %v1698_v7 = vld [vmem:[%s3328_s9] sm:$0x3] }
 0x3ec   :  { %v1521_v14 = vadd.f32 %v1520_v63, %v1519_v49 }
 0x3ed   :  { %v1487_v12 = vrot.slane %v1486_v55, 1  ;;  %v1626_v59 = vadd.f32 %v1625_v0, %v1624_v6  ;;  %v1660_v32 = vrot.slane %v1659_v22, 4 }
 0x3ee   :  { %v1522_v58 = vrot.slane %v1521_v14, 2 }
 0x3ef   :  { %v1488_v1 = vadd.f32 %v1487_v12, %v1486_v55  ;;  %v1627_v50 = vrot.slane %v1626_v59, 1  ;;  %v1661_v26 = vadd.f32 %v1660_v32, %v1659_v22 }
 0x3f0   :  { %v1523_v16 = vadd.f32 %v1522_v58, %v1521_v14 }
 0x3f1   :  { %v1526_v8 = vmul.f32 0.00390625, %v1488_v1  ;;  %v1628_v52 = vadd.f32 %v1627_v50, %v1626_v59  ;;  %v1662_v11 = vrot.slane %v1661_v26, 2 }
 0x3f2   :  { %v1524_v56 = vrot.slane %v1523_v16, 1 }
 0x3f3   :  { %v1668_v29 = vmul.f32 %v1526_v8, %v1526_v8  ;;  %v1663_v48 = vadd.f32 %v1662_v11, %v1661_v26  ;;  %v1666_v9 = vmul.f32 0.00390625, %v1628_v52 }
 0x3f4   :  { %v1525_v37 = vadd.f32 %v1524_v56, %v1523_v16 }
 0x3f5   :  { %v1664_v31 = vrot.slane %v1663_v48, 1  ;;  %v1670_v3 = vsub.f32 %v1666_v9, %v1668_v29 }
 0x3f6   :  { %v1527_v47 = vmul.f32 0.00390625, %v1525_v37 }
 0x3f7   :  { %v1665_v61 = vadd.f32 %v1664_v31, %v1663_v48  ;;  %v1672_v57 = vmax.f32 %v1670_v3, 0.0 }
 0x3f8   :  { %v1669_v62 = vmul.f32 %v1527_v47, %v1527_v47 }
 0x3f9   :  { %v1667_v60 = vmul.f32 0.00390625, %v1665_v61  ;;  %v1675_v30 = vadd.f32 1e-05, %v1672_v57 }
 0x3fb   :  { %v1671_v34 = vsub.f32 %v1667_v60, %v1669_v62  ;;  %2221 = vrsqrt.f32 %v1675_v30 }
 0x3fd   :  { %v1673_v42 = vmax.f32 %v1671_v34, 0.0 }
 0x3ff   :  { %v1676_v43 = vadd.f32 1e-05, %v1673_v42 }
 0x401   :  { %2223 = vrsqrt.f32 %v1676_v43 }
 0x405   :  { %v2222_v21 = vpop.eup %2221 }
 0x40b   :  { %v2224_v45 = vpop.eup %2223 }
 0x40c   :  { %v1681_v33 = vcombine.low %v2222_v21, %v2224_v45 }
 0x40e   :  { %v1688_v28 = vrot.slane %v1681_v33, %v1687_v35 }
 0x410   :  { %v1695_v27 = vrot.slane %v1688_v28, %v1687_v35 }
 0x412   :  { %v1697_v18 = vmul.f32 %v1695_v27, %v1674_v13 }
 0x414   :  { %v1703_v39 = vrot.slane %v1697_v18, %v3396_v15  ;;  %v1707_v5 = vrot.slane %v1697_v18, %v1706_v54  ;;  %vm1899_vm5 = vcmp.ge.f32.partialorder %v1697_v18, 0.0 }
 0x415   :  { %v1900_v53 = vsel %vm1899_vm5, 1, %v3397_v25 }
 0x416   :  { %v1710_v46 = vmul.f32 %v1703_v39, %v1526_v8  ;;  %v1711_v24 = vmul.f32 %v1707_v5, %v1527_v47  ;;  %v1904_v23 = vrot.slane %v1900_v53, %v3396_v15  ;;  %v1908_v49 = vrot.slane %v1900_v53, %v1706_v54 }
 0x418   :  { %v1714_v41 = vcombine.low %v1710_v46, %v1711_v24  ;;  %vm1909_vm6 = vcmp.eq.s32.totalorder %v1904_v23, 1  ;;  %vm1910_vm7 = vcmp.eq.s32.totalorder %v1908_v49, 1 }
 0x419   :  { %v1928_v40 = vsel %vm1909_vm6, %v3240_v17, %v3251_v19  ;;  %v1929_v20 = vsel %vm1910_vm7, %v3258_v51, %v3264_v36 }
 0x41a   :  { %v1721_v44 = vrot.slane %v1714_v41, %v1687_v35  ;;  %v1930_v63 = vmul.f32 %v1928_v40, %v1703_v39  ;;  %v1931_v6 = vmul.f32 %v1929_v20, %v1707_v5 }
 0x41c   :  { %v1728_v55 = vrot.slane %v1721_v44, %v1687_v35 }
 0x41e   :  { %v1730_v14 = vsub.f32 %v1698_v7, %v1728_v55 }
 0x420   :  { %v1936_v0 = vrot.slane %v1730_v14, %v3396_v15  ;;  %v1940_v22 = vrot.slane %v1730_v14, %v1706_v54 }
 0x422   :  { %v1943_v12 = vadd.f32 %v1936_v0, %v1930_v63  ;;  %v1944_v58 = vadd.f32 %v1940_v22, %v1931_v6 }
 0x424   :  { %v1947_v17 = vcombine.low %v1943_v12, %v1944_v58 }
 0x426   :  { %2040 = vst.sshfl [vmem:[#allocation2] sm:$0x33 pattern:$0x76325410] %v1947_v17 }
 0x427   :  { %2236 = shalt.err (!%p2233_p4)
}
 0x428   :  { %s2237_s27 = scalar_lea.hbm %s3329_s10, 64 }
 0x429   :  { %p2238_p5 = scmp.ne.s32.totalorder %s3329_s10, %s2237_s27  ;;  %p2241_p6 = scmp.lt.u32.totalorder %s2237_s27, %s3329_s10 }
 0x42b   :  { %p2243_p7 = pnand %p2241_p6, %p2238_p5 }
 0x42d   :  { %2246 = shalt.err (!%p2243_p7)
}
 0x42e   :  { %1966 = dma.vmem_to_hbm [thread:$0]  %s1964_s24, 64, %s3329_s10, [#allocation3]  }
 0x42f   :  { %2247 = dma.done.wait [#allocation3], 64  }
 0x430   :  { %2248 = vsyncadd [#allocation3], 4294967232 }
 0x431   :  { %1970 = vsyncpa [#allocation3], 1 }

</bundles_post_ra>
